<compile_context>
chip_gen: v7x
topology: tpu7x:2x2x1
jax: 0.10.0
libtpu: 0.0.40
codegen_flags: <defaults>
</compile_context>

<pallas_src>
import math
from functools import partial

import jax
import jax.numpy as jnp
from jax.experimental import pallas as pl
from jax.experimental.pallas import tpu as pltpu


def _leaky(x):
    # nn.LeakyReLU(0.1)
    return jnp.where(x > 0, x, 0.1 * x)


def qk2_attention_kernel(B, hw, training,
                         p_ref, rnd_ref, wconv_ref, w0_ref, vec_ref, out_ref):
    """One grid step = B batch elements stacked along the sublane axis.

    p_ref   : (B*hw, 18*dm)  im2col patches [branch-a taps | branch-b taps]
    rnd_ref : (B*hw, hh)     uniform(0,1) dropout randoms
    wconv   : (18*dm, 3*dm)  block-diag fused depthwise+pointwise weight
    w0      : (3*dm, hh)     Linear weight (transposed, kernel layout)
    vec     : (3, hh)        rows = [linear bias, LayerNorm gamma, LayerNorm beta]
    out     : (B*hw, hh)
    """
    # conv1 / conv2 of both branches as a single MXU matmul
    y = jnp.dot(p_ref[...], wconv_ref[...],
                preferred_element_type=jnp.float32)          # (B*hw, 3*dm)

    # InstanceNorm2d(affine=False): per batch, per channel, over the hw spatial
    # rows of each batch segment (biased variance, eps=1e-5).  B is a small
    # compile-time constant -> statically unrolled, aligned 2D slices only.
    parts = []
    for b in range(B):
        yb = y[b * hw:(b + 1) * hw, :]
        mu = jnp.mean(yb, axis=0, keepdims=True)
        var = jnp.mean((yb - mu) ** 2, axis=0, keepdims=True)
        parts.append((yb - mu) * jax.lax.rsqrt(var + 1e-5))
    yn = jnp.concatenate(parts, axis=0) if B > 1 else parts[0]

    act = _leaky(yn)                                         # LeakyReLU(0.1)

    # conv0: Linear(3*dm -> hh) + bias
    lin = jnp.dot(act, w0_ref[...],
                  preferred_element_type=jnp.float32) + vec_ref[0:1, :]

    # LayerNorm(hh), eps=1e-5, affine
    mu = jnp.mean(lin, axis=-1, keepdims=True)
    var = jnp.mean((lin - mu) ** 2, axis=-1, keepdims=True)
    ln = (lin - mu) * jax.lax.rsqrt(var + 1e-5) * vec_ref[1:2, :] + vec_ref[2:3, :]

    act2 = _leaky(ln)

    # softmax over last dim
    m = jnp.max(act2, axis=-1, keepdims=True)
    e = jnp.exp(act2 - m)
    sm = e / jnp.sum(e, axis=-1, keepdims=True)

    # F.dropout(p=0.1) -- training=True is the reference default.
    if training:
        keep = rnd_ref[...] >= jnp.float32(0.1)              # keep prob 0.9
        sm = jnp.where(keep, sm * jnp.float32(1.0 / 0.9), 0.0)

    out_ref[...] = sm.astype(out_ref.dtype)


def _im2col_3x3(x):
    """x: (bs, h, w, c) -> (bs, h*w, 9*c) zero-padded 3x3 patches.
    Tap order is (u, v) row-major, matching _fuse_dw_pw below. Layout-only glue."""
    bs, h, w, c = x.shape
    xp = jnp.pad(x, ((0, 0), (1, 1), (1, 1), (0, 0)))
    cols = [xp[:, u:u + h, v:v + w, :].reshape(bs, h * w, c)
            for u in range(3) for v in range(3)]
    return jnp.concatenate(cols, axis=-1)


def _fuse_dw_pw(kdw, wpw):
    """Fuse depthwise 3x3 (kdw: (3,3,c); torch (c,1,3,3) -> (3,3,c)) with
    pointwise 1x1 (wpw: (c,out); torch (out,c,1,1) -> (c,out)) into a single
    (9*c, out) weight applied to im2col patches."""
    c, out = wpw.shape
    return (kdw.reshape(9, c)[:, :, None] * wpw[None, :, :]).reshape(9 * c, out)


def qk2_attention(x, params, nhead, height, *, dropout_key,
                  training=True, batch_block=8):
    """x: (hw, bs, d_model) as in the PyTorch forward. Returns (bs, hw, height*height)."""
    hw, bs, ch = x.shape
    h = w = int(math.isqrt(hw))
    assert h * w == hw
    assert nhead == 2, "a, b = torch.split(...) implies nhead == 2"
    dm = ch // nhead
    hh = height * height

    (kdw1, bdw1, wpw1, bpw1, kdw2, bdw2, wpw2, bpw2, w0, b0, ln_g, ln_b) = params
    # Depthwise/pointwise conv biases are constant over the spatial dims, so the
    # following InstanceNorm (affine=False) cancels them exactly.
    del bdw1, bpw1, bdw2, bpw2

    # glue: NCHW-equivalent rearrangement done as NHWC, then 3x3 im2col.
    xt = jnp.transpose(x, (1, 0, 2)).reshape(bs, h, w, ch)
    pa = _im2col_3x3(xt[..., :dm])                       # (bs, hw, 9*dm)
    pb = _im2col_3x3(xt[..., dm:])                       # (bs, hw, 9*dm)
    patches = jnp.concatenate([pa, pb], axis=-1)         # (bs, hw, 18*dm)

    # fused conv weights, block-diagonal across the two branches
    wa = _fuse_dw_pw(kdw1, wpw1)                         # (9*dm, dm)
    wb = _fuse_dw_pw(kdw2, wpw2)                         # (9*dm, 2*dm)
    w_conv = jnp.zeros((18 * dm, 3 * dm), jnp.float32)
    w_conv = w_conv.at[:9 * dm, :dm].set(wa)
    w_conv = w_conv.at[9 * dm:, dm:].set(wb)

    vecs = jnp.concatenate([b0, ln_g, ln_b], axis=0)     # (3, hh)

    # batch blocking: B batches per grid step, stacked on the sublane axis
    B = min(batch_block, bs)
    nb = pl.cdiv(bs, B)
    pbs = nb * B
    if pbs != bs:
        patches = jnp.pad(patches, ((0, pbs - bs), (0, 0), (0, 0)))
    patches = patches.reshape(pbs * hw, 18 * dm)

    # TODO(synk): torch's dropout RNG stream is not reproducible; a fresh mask is
    # drawn per call from the caller-supplied jax.random key instead.
    rnd = jax.random.uniform(dropout_key, (pbs * hw, hh), jnp.float32)

    kernel = partial(qk2_attention_kernel, B, hw, training)

    out = pl.pallas_call(
        kernel,
        out_shape=jax.ShapeDtypeStruct((pbs * hw, hh), jnp.float32),
        grid_spec=pltpu.PrefetchScalarGridSpec(
            num_scalar_prefetch=0,
            grid=(nb,),
            in_specs=[
                pl.BlockSpec((B * hw, 18 * dm), lambda i: (i, 0)),   # im2col patches
                pl.BlockSpec((B * hw, hh), lambda i: (i, 0)),        # dropout uniforms
                pl.BlockSpec((18 * dm, 3 * dm), lambda i: (0, 0)),   # fused conv weight
                pl.BlockSpec((3 * dm, hh), lambda i: (0, 0)),        # linear weight
                pl.BlockSpec((3, hh), lambda i: (0, 0)),             # [b0; ln_g; ln_b]
            ],
            out_specs=pl.BlockSpec((B * hw, hh), lambda i: (i, 0)),
        ),
        compiler_params=pltpu.CompilerParams(
            dimension_semantics=("parallel",)),
    )(patches, rnd, w_conv, w0, vecs)

    return out.reshape(pbs, hw, hh)[:bs]


def init_params(key, d_model, nhead, height):
    """Deterministic synthetic parameters (already in kernel-friendly layouts)."""
    dm = d_model // nhead
    hh = height * height
    ks = jax.random.split(key, 12)
    s = 0.2
    kdw1 = jax.random.normal(ks[0], (3, 3, dm), jnp.float32) * s      # torch (dm,1,3,3) -> (3,3,dm)
    bdw1 = jax.random.normal(ks[1], (1, dm), jnp.float32) * s
    wpw1 = jax.random.normal(ks[2], (dm, dm), jnp.float32) * s         # torch (out,in,1,1) -> (in,out)
    bpw1 = jax.random.normal(ks[3], (1, dm), jnp.float32) * s
    kdw2 = jax.random.normal(ks[4], (3, 3, dm), jnp.float32) * s
    bdw2 = jax.random.normal(ks[5], (1, dm), jnp.float32) * s
    wpw2 = jax.random.normal(ks[6], (dm, 2 * dm), jnp.float32) * s
    bpw2 = jax.random.normal(ks[7], (1, 2 * dm), jnp.float32) * s
    w0 = jax.random.normal(ks[8], (3 * dm, hh), jnp.float32) * s       # torch (hh,3dm) -> (3dm,hh)
    b0 = jax.random.normal(ks[9], (1, hh), jnp.float32) * s
    ln_g = 1.0 + 0.1 * jax.random.normal(ks[10], (1, hh), jnp.float32)
    ln_b = 0.1 * jax.random.normal(ks[11], (1, hh), jnp.float32)
    return (kdw1, bdw1, wpw1, bpw1, kdw2, bdw2, wpw2, bpw2, w0, b0, ln_g, ln_b)


if __name__ == "__main__":
    d_model, nhead, height = 16, 2, 8          # nhead must be 2 (a, b = split(...))
    hw, bs = height * height, 2                # input seq length = h*w = 64

    key = jax.random.PRNGKey(0)
    kx, kp, kd = jax.random.split(key, 3)
    x = jax.random.normal(kx, (hw, bs, d_model), jnp.float32)   # (hw, bs, ch)
    params = init_params(kp, d_model, nhead, height)

    attn = qk2_attention(x, params, nhead, height, dropout_key=kd, training=True)
    attn = jax.block_until_ready(attn)
    assert attn.shape == (bs, hw, height * height)
    assert bool(jnp.all(jnp.isfinite(attn)))
    print("KERNEL_OK")
</pallas_src>

<mosaic_0001>
module attributes {stable_mosaic.version = 11 : i64} {
  func.func @qk2_attention_kernel(%arg0: i32, %arg1: memref<128x144xf32, #tpu.memory_space<vmem>>, %arg2: memref<128x64xf32, #tpu.memory_space<vmem>>, %arg3: memref<144x24xf32, #tpu.memory_space<vmem>>, %arg4: memref<24x64xf32, #tpu.memory_space<vmem>>, %arg5: memref<3x64xf32, #tpu.memory_space<vmem>>, %arg6: memref<128x64xf32, #tpu.memory_space<vmem>>) attributes {dimension_semantics = [#tpu.dimension_semantics<parallel>], iteration_bounds = array<i64: 1>, scalar_prefetch = 0 : i64, scratch_operands = 0 : i64, tpu.core_type = #tpu.core_type<tc>, window_params = [{transform_indices = @transform_0, window_bounds = array<i64: 128, 144>}, {transform_indices = @transform_1, window_bounds = array<i64: 128, 64>}, {pipeline_mode = #tpu.pipeline_mode<synchronous>, transform_indices = @transform_2, window_bounds = array<i64: 144, 24>}, {pipeline_mode = #tpu.pipeline_mode<synchronous>, transform_indices = @transform_3, window_bounds = array<i64: 24, 64>}, {pipeline_mode = #tpu.pipeline_mode<synchronous>, transform_indices = @transform_4, window_bounds = array<i64: 3, 64>}, {transform_indices = @transform_5, window_bounds = array<i64: 128, 64>}]} {
    %c0 = arith.constant 0 : index
    %c0_0 = arith.constant 0 : index
    %0 = vector.load %arg1[%c0, %c0_0] : memref<128x144xf32, #tpu.memory_space<vmem>>, vector<128x144xf32>
    %c0_1 = arith.constant 0 : index
    %c0_2 = arith.constant 0 : index
    %1 = vector.load %arg3[%c0_1, %c0_2] : memref<144x24xf32, #tpu.memory_space<vmem>>, vector<144x24xf32>
    %cst = arith.constant dense<0.000000e+00> : vector<128x24xf32>
    %2 = tpu.matmul %0, %1, %cst {dimension_numbers = #tpu.dot_dimension_numbers<[1], [0], [0], [1], [0, 0, 1, 1], [], []>} : vector<128x144xf32>, vector<144x24xf32>, vector<128x24xf32> -> vector<128x24xf32>
    %3 = vector.extract_strided_slice %2 {offsets = [0, 0], sizes = [64, 24], strides = [1, 1]} : vector<128x24xf32> to vector<64x24xf32>
    %cst_3 = arith.constant dense<0.000000e+00> : vector<24xf32>
    %4 = vector.multi_reduction <add>, %3, %cst_3 [0] : vector<64x24xf32> to vector<24xf32>
    %5 = vector.shape_cast %4 : vector<24xf32> to vector<1x24xf32>
    %cst_4 = arith.constant 6.400000e+01 : f32
    %6 = vector.broadcast %cst_4 : f32 to vector<1x24xf32>
    %7 = arith.divf %5, %6 : vector<1x24xf32>
    %8 = vector.broadcast %7 : vector<1x24xf32> to vector<64x24xf32>
    %9 = arith.subf %3, %8 : vector<64x24xf32>
    %10 = arith.mulf %9, %9 : vector<64x24xf32>
    %cst_5 = arith.constant dense<0.000000e+00> : vector<24xf32>
    %11 = vector.multi_reduction <add>, %10, %cst_5 [0] : vector<64x24xf32> to vector<24xf32>
    %12 = vector.shape_cast %11 : vector<24xf32> to vector<1x24xf32>
    %cst_6 = arith.constant 6.400000e+01 : f32
    %13 = vector.broadcast %cst_6 : f32 to vector<1x24xf32>
    %14 = arith.divf %12, %13 : vector<1x24xf32>
    %15 = vector.broadcast %7 : vector<1x24xf32> to vector<64x24xf32>
    %16 = arith.subf %3, %15 : vector<64x24xf32>
    %cst_7 = arith.constant 9.99999974E-6 : f32
    %17 = vector.broadcast %cst_7 : f32 to vector<1x24xf32>
    %18 = arith.addf %14, %17 : vector<1x24xf32>
    %19 = math.rsqrt %18 : vector<1x24xf32>
    %20 = vector.broadcast %19 : vector<1x24xf32> to vector<64x24xf32>
    %21 = arith.mulf %16, %20 : vector<64x24xf32>
    %22 = vector.extract_strided_slice %2 {offsets = [64, 0], sizes = [64, 24], strides = [1, 1]} : vector<128x24xf32> to vector<64x24xf32>
    %cst_8 = arith.constant dense<0.000000e+00> : vector<24xf32>
    %23 = vector.multi_reduction <add>, %22, %cst_8 [0] : vector<64x24xf32> to vector<24xf32>
    %24 = vector.shape_cast %23 : vector<24xf32> to vector<1x24xf32>
    %cst_9 = arith.constant 6.400000e+01 : f32
    %25 = vector.broadcast %cst_9 : f32 to vector<1x24xf32>
    %26 = arith.divf %24, %25 : vector<1x24xf32>
    %27 = vector.broadcast %26 : vector<1x24xf32> to vector<64x24xf32>
    %28 = arith.subf %22, %27 : vector<64x24xf32>
    %29 = arith.mulf %28, %28 : vector<64x24xf32>
    %cst_10 = arith.constant dense<0.000000e+00> : vector<24xf32>
    %30 = vector.multi_reduction <add>, %29, %cst_10 [0] : vector<64x24xf32> to vector<24xf32>
    %31 = vector.shape_cast %30 : vector<24xf32> to vector<1x24xf32>
    %cst_11 = arith.constant 6.400000e+01 : f32
    %32 = vector.broadcast %cst_11 : f32 to vector<1x24xf32>
    %33 = arith.divf %31, %32 : vector<1x24xf32>
    %34 = vector.broadcast %26 : vector<1x24xf32> to vector<64x24xf32>
    %35 = arith.subf %22, %34 : vector<64x24xf32>
    %cst_12 = arith.constant 9.99999974E-6 : f32
    %36 = vector.broadcast %cst_12 : f32 to vector<1x24xf32>
    %37 = arith.addf %33, %36 : vector<1x24xf32>
    %38 = math.rsqrt %37 : vector<1x24xf32>
    %39 = vector.broadcast %38 : vector<1x24xf32> to vector<64x24xf32>
    %40 = arith.mulf %35, %39 : vector<64x24xf32>
    %41 = tpu.concatenate %21, %40 in 0 : vector<64x24xf32>, vector<64x24xf32> -> vector<128x24xf32>
    %cst_13 = arith.constant 0.000000e+00 : f32
    %42 = vector.broadcast %cst_13 : f32 to vector<128x24xf32>
    %43 = arith.cmpf ogt, %41, %42 : vector<128x24xf32>
    %cst_14 = arith.constant 1.000000e-01 : f32
    %44 = vector.broadcast %cst_14 : f32 to vector<128x24xf32>
    %45 = arith.mulf %44, %41 : vector<128x24xf32>
    %46 = arith.select %43, %41, %45 : vector<128x24xi1>, vector<128x24xf32>
    %c0_15 = arith.constant 0 : index
    %c0_16 = arith.constant 0 : index
    %47 = vector.load %arg4[%c0_15, %c0_16] : memref<24x64xf32, #tpu.memory_space<vmem>>, vector<24x64xf32>
    %cst_17 = arith.constant dense<0.000000e+00> : vector<128x64xf32>
    %48 = tpu.matmul %46, %47, %cst_17 {dimension_numbers = #tpu.dot_dimension_numbers<[1], [0], [0], [1], [0, 0, 1, 1], [], []>} : vector<128x24xf32>, vector<24x64xf32>, vector<128x64xf32> -> vector<128x64xf32>
    %c0_18 = arith.constant 0 : index
    %c0_19 = arith.constant 0 : index
    %49 = vector.load %arg5[%c0_18, %c0_19] : memref<3x64xf32, #tpu.memory_space<vmem>>, vector<1x64xf32>
    %50 = vector.broadcast %49 : vector<1x64xf32> to vector<128x64xf32>
    %51 = arith.addf %48, %50 : vector<128x64xf32>
    %cst_20 = arith.constant dense<0.000000e+00> : vector<128xf32>
    %52 = vector.multi_reduction <add>, %51, %cst_20 [1] : vector<128x64xf32> to vector<128xf32>
    %53 = vector.shape_cast %52 : vector<128xf32> to vector<128x1xf32>
    %cst_21 = arith.constant 6.400000e+01 : f32
    %54 = vector.broadcast %cst_21 : f32 to vector<128x1xf32>
    %55 = arith.divf %53, %54 : vector<128x1xf32>
    %56 = vector.broadcast %55 : vector<128x1xf32> to vector<128x64xf32>
    %57 = arith.subf %51, %56 : vector<128x64xf32>
    %58 = arith.mulf %57, %57 : vector<128x64xf32>
    %cst_22 = arith.constant dense<0.000000e+00> : vector<128xf32>
    %59 = vector.multi_reduction <add>, %58, %cst_22 [1] : vector<128x64xf32> to vector<128xf32>
    %60 = vector.shape_cast %59 : vector<128xf32> to vector<128x1xf32>
    %cst_23 = arith.constant 6.400000e+01 : f32
    %61 = vector.broadcast %cst_23 : f32 to vector<128x1xf32>
    %62 = arith.divf %60, %61 : vector<128x1xf32>
    %63 = vector.broadcast %55 : vector<128x1xf32> to vector<128x64xf32>
    %64 = arith.subf %51, %63 : vector<128x64xf32>
    %cst_24 = arith.constant 9.99999974E-6 : f32
    %65 = vector.broadcast %cst_24 : f32 to vector<128x1xf32>
    %66 = arith.addf %62, %65 : vector<128x1xf32>
    %67 = math.rsqrt %66 : vector<128x1xf32>
    %68 = vector.broadcast %67 : vector<128x1xf32> to vector<128x64xf32>
    %69 = arith.mulf %64, %68 : vector<128x64xf32>
    %c1 = arith.constant 1 : index
    %c0_25 = arith.constant 0 : index
    %70 = vector.load %arg5[%c1, %c0_25] : memref<3x64xf32, #tpu.memory_space<vmem>>, vector<1x64xf32>
    %71 = vector.broadcast %70 : vector<1x64xf32> to vector<128x64xf32>
    %72 = arith.mulf %69, %71 : vector<128x64xf32>
    %c2 = arith.constant 2 : index
    %c0_26 = arith.constant 0 : index
    %73 = vector.load %arg5[%c2, %c0_26] : memref<3x64xf32, #tpu.memory_space<vmem>>, vector<1x64xf32>
    %74 = vector.broadcast %73 : vector<1x64xf32> to vector<128x64xf32>
    %75 = arith.addf %72, %74 : vector<128x64xf32>
    %cst_27 = arith.constant 0.000000e+00 : f32
    %76 = vector.broadcast %cst_27 : f32 to vector<128x64xf32>
    %77 = arith.cmpf ogt, %75, %76 : vector<128x64xf32>
    %cst_28 = arith.constant 1.000000e-01 : f32
    %78 = vector.broadcast %cst_28 : f32 to vector<128x64xf32>
    %79 = arith.mulf %78, %75 : vector<128x64xf32>
    %80 = arith.select %77, %75, %79 : vector<128x64xi1>, vector<128x64xf32>
    %cst_29 = arith.constant dense<0xFF800000> : vector<128xf32>
    %81 = vector.multi_reduction <maximumf>, %80, %cst_29 [1] : vector<128x64xf32> to vector<128xf32>
    %82 = vector.shape_cast %81 : vector<128xf32> to vector<128x1xf32>
    %83 = vector.broadcast %82 : vector<128x1xf32> to vector<128x64xf32>
    %84 = arith.subf %80, %83 : vector<128x64xf32>
    %85 = math.exp %84 : vector<128x64xf32>
    %cst_30 = arith.constant dense<0.000000e+00> : vector<128xf32>
    %86 = vector.multi_reduction <add>, %85, %cst_30 [1] : vector<128x64xf32> to vector<128xf32>
    %87 = vector.shape_cast %86 : vector<128xf32> to vector<128x1xf32>
    %88 = vector.broadcast %87 : vector<128x1xf32> to vector<128x64xf32>
    %89 = arith.divf %85, %88 : vector<128x64xf32>
    %c0_31 = arith.constant 0 : index
    %c0_32 = arith.constant 0 : index
    %90 = vector.load %arg2[%c0_31, %c0_32] : memref<128x64xf32, #tpu.memory_space<vmem>>, vector<128x64xf32>
    %cst_33 = arith.constant 1.000000e-01 : f32
    %91 = vector.broadcast %cst_33 : f32 to vector<128x64xf32>
    %92 = arith.cmpf oge, %90, %91 : vector<128x64xf32>
    %cst_34 = arith.constant 1.11111116 : f32
    %93 = vector.broadcast %cst_34 : f32 to vector<128x64xf32>
    %94 = arith.mulf %89, %93 : vector<128x64xf32>
    %cst_35 = arith.constant 0.000000e+00 : f32
    %95 = vector.broadcast %cst_35 : f32 to vector<128x64xf32>
    %96 = arith.select %92, %94, %95 : vector<128x64xi1>, vector<128x64xf32>
    %c0_36 = arith.constant 0 : index
    %c0_37 = arith.constant 0 : index
    %97 = vector.load %arg6[%c0_36, %c0_37] : memref<128x64xf32, #tpu.memory_space<vmem>>, vector<128x64xf32>
    tpu.vector_store %arg6[%c0_36, %c0_37], %96 {strides = array<i32>} : memref<128x64xf32, #tpu.memory_space<vmem>>, vector<128x64xf32>,
    return
  }
  func.func @transform_0(%arg0: i32) -> (i32, i32) {
    %c0_i32 = arith.constant 0 : i32
    %c0_i32_0 = arith.constant 0 : i32
    return %arg0, %c0_i32 : i32, i32
  }
  func.func @transform_1(%arg0: i32) -> (i32, i32) {
    %c0_i32 = arith.constant 0 : i32
    %c0_i32_0 = arith.constant 0 : i32
    return %arg0, %c0_i32 : i32, i32
  }
  func.func @transform_2(%arg0: i32) -> (i32, i32) {
    %c0_i32 = arith.constant 0 : i32
    %c0_i32_0 = arith.constant 0 : i32
    %c0_i32_1 = arith.constant 0 : i32
    return %c0_i32, %c0_i32_0 : i32, i32
  }
  func.func @transform_3(%arg0: i32) -> (i32, i32) {
    %c0_i32 = arith.constant 0 : i32
    %c0_i32_0 = arith.constant 0 : i32
    %c0_i32_1 = arith.constant 0 : i32
    return %c0_i32, %c0_i32_0 : i32, i32
  }
  func.func @transform_4(%arg0: i32) -> (i32, i32) {
    %c0_i32 = arith.constant 0 : i32
    %c0_i32_0 = arith.constant 0 : i32
    %c0_i32_1 = arith.constant 0 : i32
    return %c0_i32, %c0_i32_0 : i32, i32
  }
  func.func @transform_5(%arg0: i32) -> (i32, i32) {
    %c0_i32 = arith.constant 0 : i32
    %c0_i32_0 = arith.constant 0 : i32
    return %arg0, %c0_i32 : i32, i32
  }
}

</mosaic_0001>

<bundles_post_ra>
// kernel: tpu_custom_call.1
= control target key start
LH: loop header
LB: loop body
LE: loop exit
PB: predicated region body
PF: predicated region fallthrough
CT: control target
= control target key end

     0   :  { %v1448_v0 = vmov 0.0|0.0   ;;  %vm70_vm0 = vcmask 130048   ;;  %vm264_vm1 = vcmask 195584   ;;  %s2321_s2 = inlined_call_operand.vmem [shape: f32[144,24], index: 2, kind: input, shape index: {}]   ;;  %s2322_s0 = inlined_call_operand.vmem [shape: f32[128,144], index: 0, kind: input, shape index: {}]   ;;  %s2323_s3 = inlined_call_operand.vmem [shape: f32[24,64], index: 3, kind: input, shape index: {}]   ;;  %s2324_s4 = inlined_call_operand.vmem [shape: f32[3,64], index: 4, kind: input, shape index: {}]   ;;  %s2325_s1 = inlined_call_operand.vmem [shape: f32[128,64], index: 1, kind: input, shape index: {}]   ;;  %s2326_s5 = inlined_call_operand.vmem [shape: f32[128,64], index: 5, kind: output, shape index: {}]  }
   0x1   :  { %1298 = vmatprep.subr.bf16.mxu0 %v1448_v0  ;;  %v52_v1 = vld [vmem:[%s2321_s2] sm:$0xff]  ;;  %v53_v2 = vld [vmem:[%s2321_s2 + $0x8] sm:$0xff]  ;;  %v54_v3 = vld [vmem:[%s2321_s2 + $0x10] sm:$0xff]  ;;  %1329 = vmatprep.subr.bf16.mxu1 %v1448_v0 }
   0x2   :  { %v1299_v4 = vpack.c.bf16 %v53_v2, %v52_v1  ;;  %v55_v5 = vld [vmem:[%s2321_s2 + $0x18] sm:$0xff]  ;;  %v56_v7 = vld [vmem:[%s2321_s2 + $0x20] sm:$0xff]  ;;  %v57_v8 = vld [vmem:[%s2321_s2 + $0x28] sm:$0xff] }
   0x3   :  { %v1302_v6 = vpack.c.bf16 %v55_v5, %v54_v3  ;;  %v21_v9 = vld [vmem:[%s2322_s0 + $0x8] sm:$0xff]  ;;  %v1305_v10 = vpack.c.bf16 %v57_v8, %v56_v7  ;;  %v58_v11 = vld [vmem:[%s2321_s2 + $0x30] sm:$0xff]  ;;  %v59_v12 = vld [vmem:[%s2321_s2 + $0x38] sm:$0xff] }
   0x4   :  { %1300 = vmatpush1.bf16.msra.mxu0 %v1299_v4  ;;  %1338 = vmatpush1.bf16.msra.mxu1 %v1299_v4  ;;  %v1308_v13 = vpack.c.bf16 %v59_v12, %v58_v11  ;;  %v60_v14 = vld [vmem:[%s2321_s2 + $0x40] sm:$0xff]  ;;  %v61_v15 = vld [vmem:[%s2321_s2 + $0x48] sm:$0xff]  ;;  %v62_v18 = vld [vmem:[%s2321_s2 + $0x50] sm:$0xff] }
   0x5   :  { %1301 = vmatprep.subr.bf16.mxu0 %v1448_v0  ;;  %1330 = vmatprep.subr.bf16.mxu1 %v1448_v0  ;;  %v45_v16 = vld [vmem:[%s2322_s0 + $0xc8] sm:$0xff]  ;;  %v1311_v17 = vpack.c.bf16 %v61_v15, %v60_v14  ;;  %v63_v19 = vld [vmem:[%s2321_s2 + $0x58] sm:$0xff]  ;;  %v64_v21 = vld [vmem:[%s2321_s2 + $0x60] sm:$0xff] }
   0x6   :  { %1214 = vmatprep.mubr.msk.f32.mxu0 %vm70_vm0, %v21_v9  ;;  %1226 = vmatprep.mubr.msk.f32.mxu1 %vm70_vm0, %v45_v16  ;;  %v1314_v20 = vpack.c.bf16 %v63_v19, %v62_v18  ;;  %v65_v22 = vld [vmem:[%s2321_s2 + $0x68] sm:$0xff]  ;;  %v66_v24 = vld [vmem:[%s2321_s2 + $0x70] sm:$0xff]  ;;  %v67_v25 = vld [vmem:[%s2321_s2 + $0x78] sm:$0xff] }
   0x7   :  { %v1317_v23 = vpack.c.bf16 %v65_v22, %v64_v21  ;;  %v1320_v26 = vpack.c.bf16 %v67_v25, %v66_v24  ;;  %v68_v27 = vld [vmem:[%s2321_s2 + $0x80] sm:$0xff]  ;;  %v69_v28 = vld [vmem:[%s2321_s2 + $0x88] sm:$0xff]  ;;  %v23_v31 = vld [vmem:[%s2322_s0 + $0x18] sm:$0xff] }
   0x8   :  { %1303 = vmatpush1.bf16.msra.mxu0 %v1302_v6  ;;  %1339 = vmatpush1.bf16.msra.mxu1 %v1302_v6  ;;  %v1323_v29 = vpack.c.bf16 %v69_v28, %v68_v27  ;;  %v20_v30 = vld [vmem:[%s2322_s0] sm:$0xff]  ;;  %v47_v33 = vld [vmem:[%s2322_s0 + $0xd8] sm:$0xff]  ;;  %v22_v34 = vld [vmem:[%s2322_s0 + $0x10] sm:$0xff] }
   0x9   :  { %1304 = vmatprep.subr.bf16.mxu0 %v1448_v0  ;;  %1331 = vmatprep.subr.bf16.mxu1 %v1448_v0  ;;  %v44_v32 = vld [vmem:[%s2322_s0 + $0xc0] sm:$0xff]  ;;  %v25_v35 = vld [vmem:[%s2322_s0 + $0x28] sm:$0xff]  ;;  %v46_v36 = vld [vmem:[%s2322_s0 + $0xd0] sm:$0xff] }
   0xa   :  { %v49_v37 = vld [vmem:[%s2322_s0 + $0xe8] sm:$0xff]  ;;  %v24_v38 = vld [vmem:[%s2322_s0 + $0x20] sm:$0xff]  ;;  %v27_v39 = vld [vmem:[%s2322_s0 + $0x38] sm:$0xff] }
   0xb   :  { %v48_v40 = vld [vmem:[%s2322_s0 + $0xe0] sm:$0xff]  ;;  %v51_v41 = vld [vmem:[%s2322_s0 + $0xf8] sm:$0xff]  ;;  %v26_v42 = vld [vmem:[%s2322_s0 + $0x30] sm:$0xff] }
   0xc   :  { %1306 = vmatpush1.bf16.msra.mxu0 %v1305_v10  ;;  %1340 = vmatpush1.bf16.msra.mxu1 %v1305_v10  ;;  %v29_v43 = vld [vmem:[%s2322_s0 + $0x48] sm:$0xff]  ;;  %v50_v44 = vld [vmem:[%s2322_s0 + $0xf0] sm:$0xff]  ;;  %v28_v45 = vld [vmem:[%s2322_s0 + $0x40] sm:$0xff] }
   0xd   :  { %1307 = vmatprep.subr.bf16.mxu0 %v1448_v0  ;;  %1332 = vmatprep.subr.bf16.mxu1 %v1448_v0  ;;  %v31_v46 = vld [vmem:[%s2322_s0 + $0x58] sm:$0xff]  ;;  %v30_v47 = vld [vmem:[%s2322_s0 + $0x50] sm:$0xff]  ;;  %v33_v48 = vld [vmem:[%s2322_s0 + $0x68] sm:$0xff] }
   0xe   :  { %v32_v49 = vld [vmem:[%s2322_s0 + $0x60] sm:$0xff]  ;;  %v35_v50 = vld [vmem:[%s2322_s0 + $0x78] sm:$0xff]  ;;  %v34_v51 = vld [vmem:[%s2322_s0 + $0x70] sm:$0xff] }
   0xf   :  { %v37_v52 = vld [vmem:[%s2322_s0 + $0x88] sm:$0xff]  ;;  %v36_v53 = vld [vmem:[%s2322_s0 + $0x80] sm:$0xff]  ;;  %v39_v54 = vld [vmem:[%s2322_s0 + $0x98] sm:$0xff] }
  0x10   :  { %1309 = vmatpush1.bf16.msra.mxu0 %v1308_v13  ;;  %1341 = vmatpush1.bf16.msra.mxu1 %v1308_v13  ;;  %v38_v55 = vld [vmem:[%s2322_s0 + $0x90] sm:$0xff]  ;;  %v41_v56 = vld [vmem:[%s2322_s0 + $0xa8] sm:$0xff]  ;;  %v40_v57 = vld [vmem:[%s2322_s0 + $0xa0] sm:$0xff] }
  0x11   :  { %1310 = vmatprep.subr.bf16.mxu0 %v1448_v0  ;;  %1333 = vmatprep.subr.bf16.mxu1 %v1448_v0  ;;  %v43_v58 = vld [vmem:[%s2322_s0 + $0xb8] sm:$0xff]  ;;  %v42_v59 = vld [vmem:[%s2322_s0 + $0xb0] sm:$0xff]  ;;  %v454_v60 = vld [vmem:[%s2323_s3] sm:$0xff] }
  0x12   :  { %v455_v61 = vld [vmem:[%s2323_s3 + $0x8] sm:$0xff]  ;;  %v456_v63 = vld [vmem:[%s2323_s3 + $0x10] sm:$0xff] }
  0x13   :  { %v1325_v62 = vpack.c.bf16 %v455_v61, %v454_v60 }
  0x14   :  { %1312 = vmatpush1.bf16.msra.mxu0 %v1311_v17  ;;  %1342 = vmatpush1.bf16.msra.mxu1 %v1311_v17 }
  0x15   :  { %1313 = vmatprep.subr.bf16.mxu0 %v1448_v0  ;;  %1334 = vmatprep.subr.bf16.mxu1 %v1448_v0 }
  0x18   :  { %1315 = vmatpush1.bf16.msra.mxu0 %v1314_v20  ;;  %1343 = vmatpush1.bf16.msra.mxu1 %v1314_v20 }
  0x19   :  { %1316 = vmatprep.subr.bf16.mxu0 %v1448_v0  ;;  %1335 = vmatprep.subr.bf16.mxu1 %v1448_v0 }
  0x1c   :  { %1318 = vmatpush1.bf16.msra.mxu0 %v1317_v23  ;;  %1344 = vmatpush1.bf16.msra.mxu1 %v1317_v23 }
  0x1d   :  { %1319 = vmatprep.subr.bf16.mxu0 %v1448_v0  ;;  %1336 = vmatprep.subr.bf16.mxu1 %v1448_v0 }
  0x20   :  { %1321 = vmatpush1.bf16.msra.mxu0 %v1320_v26  ;;  %1345 = vmatpush1.bf16.msra.mxu1 %v1320_v26 }
  0x21   :  { %1322 = vmatprep.subr.bf16.mxu0 %v1448_v0  ;;  %1337 = vmatprep.subr.bf16.mxu1 %v1448_v0 }
  0x24   :  { %1324 = vmatpush1.bf16.msra.mxu0 %v1323_v29  ;;  %1346 = vmatpush1.bf16.msra.mxu1 %v1323_v29 }
  0x25   :  { %1326 = vmatprep.subr.bf16.mxu1 %v1325_v62 }
  0x27   :  { %184 = vmatmul.mubr.f32.vlgmr.msra.gmra.mrb[0].mxu0 %v20_v30  ;;  %244 = vmatmul.mubr.f32.vlgmr.msra.gmra.mrb[0].mxu1 %v44_v32 }
  0x28   :  { %1215 = vmatprep.mubr.msk.f32.mxu0 %vm70_vm0, %v23_v31  ;;  %1227 = vmatprep.mubr.msk.f32.mxu1 %vm70_vm0, %v47_v33 }
  0x29   :  { %1328 = vmatpush3.bf16.msra.mxu1 %v1325_v62 }
  0x2a   :  { %1272 = vmatprep.subr.mxu1 %v456_v63 }
  0x2b   :  { %189 = vmatmul.mubr.f32.gmra.mrb[2].mxu0 %v22_v34  ;;  %249 = vmatmul.mubr.f32.gmra.mrb[2].mxu1 %v46_v36 }
  0x2c   :  { %1216 = vmatprep.mubr.msk.f32.mxu0 %vm70_vm0, %v25_v35  ;;  %1228 = vmatprep.mubr.msk.f32.mxu1 %vm70_vm0, %v49_v37 }
  0x2d   :  { %1273 = vmatpush3.msra.mxu1 %v456_v63 }
  0x2f   :  { %194 = vmatmul.mubr.f32.gmra.mrb[4].mxu0 %v24_v38  ;;  %254 = vmatmul.mubr.f32.gmra.mrb[4].mxu1 %v48_v40 }
  0x30   :  { %1217 = vmatprep.mubr.msk.f32.mxu0 %vm70_vm0, %v27_v39  ;;  %1229 = vmatprep.mubr.msk.f32.mxu1 %vm70_vm0, %v51_v41 }
  0x33   :  { %199 = vmatmul.mubr.f32.gmra.mrb[6].mxu0 %v26_v42  ;;  %259 = vmatmul.mubr.f32.gmra.mrb[6].mxu1 %v50_v44 }
  0x34   :  { %1218 = vmatprep.mubr.msk.f32.mxu0 %vm70_vm0, %v29_v43 }
  0x37   :  { %204 = vmatmul.mubr.f32.gmra.mrb[8].mxu0 %v28_v45 }
  0x38   :  { %1219 = vmatprep.mubr.msk.f32.mxu0 %vm70_vm0, %v31_v46 }
  0x3b   :  { %209 = vmatmul.mubr.f32.gmra.mrb[10].mxu0 %v30_v47 }
  0x3c   :  { %1220 = vmatprep.mubr.msk.f32.mxu0 %vm70_vm0, %v33_v48 }
  0x3f   :  { %214 = vmatmul.mubr.f32.gmra.mrb[12].mxu0 %v32_v49 }
  0x40   :  { %1221 = vmatprep.mubr.msk.f32.mxu0 %vm70_vm0, %v35_v50 }
  0x43   :  { %219 = vmatmul.mubr.f32.gmra.mrb[14].mxu0 %v34_v51 }
  0x44   :  { %1222 = vmatprep.mubr.msk.f32.mxu0 %vm70_vm0, %v37_v52 }
  0x47   :  { %224 = vmatmul.mubr.f32.gmra.mrb[16].mxu0 %v36_v53 }
  0x48   :  { %1223 = vmatprep.mubr.msk.f32.mxu0 %vm70_vm0, %v39_v54 }
  0x4b   :  { %229 = vmatmul.mubr.f32.gmra.mrb[18].mxu0 %v38_v55 }
  0x4c   :  { %1224 = vmatprep.mubr.msk.f32.mxu0 %vm70_vm0, %v41_v56 }
  0x4f   :  { %234 = vmatmul.mubr.f32.gmra.mrb[20].mxu0 %v40_v57 }
  0x50   :  { %1225 = vmatprep.mubr.msk.f32.mxu0 %vm70_vm0, %v43_v58 }
  0x53   :  { %239 = vmatmul.mubr.f32.gmra.mrb[22].mxu0 %v42_v59 }
  0xfa   :  { %v185_v0 = vpop.f32.mrb[0].mxu0  ;;  %v1672_v2 = vpop.f32.mrb[0].mxu1 }
  0xfb   :  { %v187_v1 = vpop.f32.mrb[1].mxu0  ;;  %v247_v3 = vpop.f32.mrb[1].mxu1  ;;  %v265_v5 = vsel %vm264_vm1, %v185_v0, 0.0 }
  0xfe   :  { %v190_v4 = vpop.f32.mrb[2].mxu0  ;;  %v1676_v8 = vpop.f32.mrb[2].mxu1 }
  0xff   :  { %v266_v6 = vsel %vm264_vm1, %v190_v4, 0.0  ;;  %v192_v7 = vpop.f32.mrb[3].mxu0  ;;  %v252_v10 = vpop.f32.mrb[3].mxu1 }
 0x100   :  { %v267_v9 = vadd.f32 %v266_v6, %v265_v5 }
 0x102   :  { %v195_v11 = vpop.f32.mrb[4].mxu0  ;;  %v1679_v14 = vpop.f32.mrb[4].mxu1 }
 0x103   :  { %v268_v12 = vsel %vm264_vm1, %v195_v11, 0.0  ;;  %v197_v13 = vpop.f32.mrb[5].mxu0  ;;  %v257_v16 = vpop.f32.mrb[5].mxu1 }
 0x104   :  { %v269_v15 = vadd.f32 %v268_v12, %v267_v9 }
 0x106   :  { %v200_v17 = vpop.f32.mrb[6].mxu0  ;;  %v1682_v20 = vpop.f32.mrb[6].mxu1 }
 0x107   :  { %v270_v18 = vsel %vm264_vm1, %v200_v17, 0.0  ;;  %v202_v19 = vpop.f32.mrb[7].mxu0  ;;  %v262_v22 = vpop.f32.mrb[7].mxu1 }
 0x108   :  { %v271_v21 = vadd.f32 %v270_v18, %v269_v15  ;;  %v343_v18 = vsel %vm264_vm1, %v1672_v2, 0.0 }
 0x10a   :  { %v205_v23 = vpop.f32.mrb[8].mxu0 }
 0x10b   :  { %v272_v24 = vsel %vm264_vm1, %v205_v23, 0.0  ;;  %v207_v25 = vpop.f32.mrb[9].mxu0 }
 0x10c   :  { %v273_v26 = vadd.f32 %v272_v24, %v271_v21  ;;  %v345_v24 = vsel %vm264_vm1, %v1676_v8, 0.0 }
 0x10e   :  { %v210_v27 = vpop.f32.mrb[10].mxu0 }
 0x10f   :  { %v274_v28 = vsel %vm264_vm1, %v210_v27, 0.0  ;;  %v212_v29 = vpop.f32.mrb[11].mxu0 }
 0x110   :  { %v275_v30 = vadd.f32 %v274_v28, %v273_v26  ;;  %v347_v29 = vsel %vm264_vm1, %v1679_v14, 0.0 }
 0x112   :  { %v215_v31 = vpop.f32.mrb[12].mxu0 }
 0x113   :  { %v276_v32 = vsel %vm264_vm1, %v215_v31, 0.0  ;;  %v217_v33 = vpop.f32.mrb[13].mxu0 }
 0x114   :  { %v277_v34 = vadd.f32 %v276_v32, %v275_v30  ;;  %v349_v30 = vsel %vm264_vm1, %v1682_v20, 0.0 }
 0x116   :  { %v220_v35 = vpop.f32.mrb[14].mxu0 }
 0x117   :  { %v278_v36 = vsel %vm264_vm1, %v220_v35, 0.0  ;;  %v222_v37 = vpop.f32.mrb[15].mxu0 }
 0x118   :  { %v279_v38 = vadd.f32 %v278_v36, %v277_v34 }
 0x11a   :  { %v280_v39 = vrot.slane %v279_v38, 4  ;;  %v1688_v40 = vpop.f32.mrb[16].mxu0 }
 0x11b   :  { %v227_v41 = vpop.f32.mrb[17].mxu0  ;;  %v336_v45 = vsel %vm264_vm1, %v1688_v40, 0.0 }
 0x11c   :  { %v281_v42 = vadd.f32 %v280_v39, %v279_v38 }
 0x11e   :  { %v282_v43 = vrot.slane %v281_v42, 2  ;;  %v1690_v44 = vpop.f32.mrb[18].mxu0 }
 0x11f   :  { %v337_v46 = vsel %vm264_vm1, %v1690_v44, 0.0  ;;  %v232_v47 = vpop.f32.mrb[19].mxu0 }
 0x120   :  { %v283_v48 = vadd.f32 %v282_v43, %v281_v42  ;;  %v338_v49 = vadd.f32 %v337_v46, %v336_v45 }
 0x122   :  { %v284_v50 = vrot.slane %v283_v48, 1  ;;  %v1696_v51 = vpop.f32.mrb[20].mxu0 }
 0x123   :  { %v339_v52 = vsel %vm264_vm1, %v1696_v51, 0.0  ;;  %v237_v53 = vpop.f32.mrb[21].mxu0 }
 0x124   :  { %v285_v54 = vadd.f32 %v284_v50, %v283_v48  ;;  %v340_v55 = vadd.f32 %v339_v52, %v338_v49 }
 0x126   :  { %v287_v56 = vmul.f32 0.015625, %v285_v54  ;;  %v240_v57 = vpop.f32.mrb[22].mxu0 }
 0x127   :  { %v242_v58 = vpop.f32.mrb[23].mxu0  ;;  %v341_v7 = vsel %vm264_vm1, %v240_v57, 0.0 }
 0x128   :  { %v1700_v59 = vsub.f32 %v185_v0, %v287_v56  ;;  %v1702_v60 = vsub.f32 %v190_v4, %v287_v56  ;;  %v1704_v61 = vsub.f32 %v195_v11, %v287_v56  ;;  %v1706_v62 = vsub.f32 %v200_v17, %v287_v56 }
 0x129   :  { %v1708_v63 = vsub.f32 %v205_v23, %v287_v56  ;;  %v1710_v1 = vsub.f32 %v210_v27, %v287_v56  ;;  %v1712_v3 = vsub.f32 %v215_v31, %v287_v56  ;;  %v1714_v5 = vsub.f32 %v220_v35, %v287_v56 }
 0x12a   :  { %v296_v6 = vmul.f32 %v1700_v59, %v1700_v59  ;;  %v297_v0 = vmul.f32 %v1702_v60, %v1702_v60  ;;  %v298_v4 = vmul.f32 %v1704_v61, %v1704_v61  ;;  %v299_v9 = vmul.f32 %v1706_v62, %v1706_v62 }
 0x12b   :  { %v300_v13 = vmul.f32 %v1708_v63, %v1708_v63  ;;  %v342_v16 = vadd.f32 %v341_v7, %v340_v55  ;;  %v301_v19 = vmul.f32 %v1710_v1, %v1710_v1  ;;  %v302_v25 = vmul.f32 %v1712_v3, %v1712_v3 }
 0x12c   :  { %v304_v10 = vsel %vm264_vm1, %v296_v6, 0.0  ;;  %v305_v11 = vsel %vm264_vm1, %v297_v0, 0.0  ;;  %v307_v15 = vsel %vm264_vm1, %v298_v4, 0.0  ;;  %v309_v21 = vsel %vm264_vm1, %v299_v9, 0.0 }
 0x12d   :  { %v306_v12 = vadd.f32 %v305_v11, %v304_v10  ;;  %v344_v22 = vadd.f32 %v343_v18, %v342_v16  ;;  %v311_v26 = vsel %vm264_vm1, %v300_v13, 0.0  ;;  %v303_v31 = vmul.f32 %v1714_v5, %v1714_v5 }
 0x12e   :  { %v313_v32 = vsel %vm264_vm1, %v301_v19, 0.0  ;;  %v315_v35 = vsel %vm264_vm1, %v302_v25, 0.0 }
 0x12f   :  { %v308_v17 = vadd.f32 %v307_v15, %v306_v12  ;;  %v346_v27 = vadd.f32 %v345_v24, %v344_v22  ;;  %v317_v38 = vsel %vm264_vm1, %v303_v31, 0.0 }
 0x131   :  { %v310_v23 = vadd.f32 %v309_v21, %v308_v17  ;;  %v348_v33 = vadd.f32 %v347_v29, %v346_v27 }
 0x133   :  { %v312_v28 = vadd.f32 %v311_v26, %v310_v23  ;;  %v350_v36 = vadd.f32 %v349_v30, %v348_v33 }
 0x135   :  { %v314_v34 = vadd.f32 %v313_v32, %v312_v28  ;;  %v351_v39 = vrot.slane %v350_v36, 4 }
 0x137   :  { %v316_v37 = vadd.f32 %v315_v35, %v314_v34  ;;  %v352_v42 = vadd.f32 %v351_v39, %v350_v36 }
 0x139   :  { %v318_v41 = vadd.f32 %v317_v38, %v316_v37  ;;  %v353_v45 = vrot.slane %v352_v42, 2 }
 0x13b   :  { %v319_v43 = vrot.slane %v318_v41, 4  ;;  %v354_v47 = vadd.f32 %v353_v45, %v352_v42 }
 0x13d   :  { %v320_v46 = vadd.f32 %v319_v43, %v318_v41  ;;  %v355_v49 = vrot.slane %v354_v47, 1 }
 0x13f   :  { %v321_v48 = vrot.slane %v320_v46, 2  ;;  %v356_v52 = vadd.f32 %v355_v49, %v354_v47 }
 0x141   :  { %v322_v50 = vadd.f32 %v321_v48, %v320_v46  ;;  %v357_v54 = vmul.f32 0.015625, %v356_v52 }
 0x143   :  { %v323_v53 = vrot.slane %v322_v50, 1  ;;  %v1750_v56 = vsub.f32 %v1688_v40, %v357_v54  ;;  %v1753_v58 = vsub.f32 %v1690_v44, %v357_v54  ;;  %v1756_v6 = vsub.f32 %v1696_v51, %v357_v54 }
 0x144   :  { %v1758_v0 = vsub.f32 %v240_v57, %v357_v54  ;;  %v1761_v7 = vsub.f32 %v1672_v2, %v357_v54  ;;  %v1764_v9 = vsub.f32 %v1676_v8, %v357_v54  ;;  %v1767_v10 = vsub.f32 %v1679_v14, %v357_v54 }
 0x145   :  { %v324_v55 = vadd.f32 %v323_v53, %v322_v50  ;;  %v1770_v40 = vsub.f32 %v1682_v20, %v357_v54  ;;  %v366_v44 = vmul.f32 %v1750_v56, %v1750_v56  ;;  %v367_v51 = vmul.f32 %v1753_v58, %v1753_v58 }
 0x146   :  { %v368_v57 = vmul.f32 %v1756_v6, %v1756_v6  ;;  %v369_v8 = vmul.f32 %v1758_v0, %v1758_v0  ;;  %v370_v12 = vmul.f32 %v1761_v7, %v1761_v7  ;;  %v371_v16 = vmul.f32 %v1764_v9, %v1764_v9 }
 0x147   :  { %v325_v4 = vmul.f32 0.015625, %v324_v55  ;;  %v374_v11 = vsel %vm264_vm1, %v366_v44, 0.0  ;;  %v375_v14 = vsel %vm264_vm1, %v367_v51, 0.0  ;;  %v372_v19 = vmul.f32 %v1767_v10, %v1767_v10 }
 0x148   :  { %v376_v20 = vadd.f32 %v375_v14, %v374_v11  ;;  %v377_v13 = vsel %vm264_vm1, %v368_v57, 0.0  ;;  %v379_v17 = vsel %vm264_vm1, %v369_v8, 0.0  ;;  %v381_v21 = vsel %vm264_vm1, %v370_v12, 0.0 }
 0x149   :  { %v326_v2 = vadd.f32 1e-05, %v325_v4  ;;  %v373_v22 = vmul.f32 %v1770_v40, %v1770_v40  ;;  %v383_v24 = vsel %vm264_vm1, %v371_v16, 0.0  ;;  %v385_v26 = vsel %vm264_vm1, %v372_v19, 0.0 }
 0x14a   :  { %v378_v15 = vadd.f32 %v377_v13, %v376_v20 }
 0x14b   :  { %1348 = vrsqrt.f32 %v326_v2  ;;  %v387_v29 = vsel %vm264_vm1, %v373_v22, 0.0 }
 0x14c   :  { %v380_v18 = vadd.f32 %v379_v17, %v378_v15 }
 0x14e   :  { %v382_v23 = vadd.f32 %v381_v21, %v380_v18 }
 0x150   :  { %v384_v25 = vadd.f32 %v383_v24, %v382_v23  ;;  %v1230_v24 = vld [vmem:[%s2324_s4] ss:$0 sm:$0xff] }
 0x152   :  { %v386_v28 = vadd.f32 %v385_v26, %v384_v25 }
 0x154   :  { %v388_v34 = vadd.f32 %v387_v29, %v386_v28 }
 0x155   :  { %v1349_v27 = vpop.eup %1348 }
 0x156   :  { %v335_v30 = vmul.f32 %v1349_v27, %v1714_v5  ;;  %v328_v31 = vmul.f32 %v1349_v27, %v1700_v59  ;;  %v329_v32 = vmul.f32 %v1349_v27, %v1702_v60  ;;  %v330_v33 = vmul.f32 %v1349_v27, %v1704_v61 }
 0x157   :  { %v331_v35 = vmul.f32 %v1349_v27, %v1706_v62  ;;  %v332_v36 = vmul.f32 %v1349_v27, %v1708_v63  ;;  %v333_v37 = vmul.f32 %v1349_v27, %v1710_v1  ;;  %v389_v41 = vrot.slane %v388_v34, 4 }
 0x158   :  { %vm406_vm2 = vcmp.gt.f32.partialorder %v328_v31, 0.0  ;;  %v422_v38 = vmul.f32 0.1, %v328_v31  ;;  %vm407_vm3 = vcmp.gt.f32.partialorder %v329_v32, 0.0  ;;  %v423_v39 = vmul.f32 0.1, %v329_v32 }
 0x159   :  { %vm408_vm4 = vcmp.gt.f32.partialorder %v330_v33, 0.0  ;;  %v424_v5 = vmul.f32 0.1, %v330_v33  ;;  %v390_v43 = vadd.f32 %v389_v41, %v388_v34  ;;  %v425_v60 = vmul.f32 0.1, %v331_v35 }
 0x15a   :  { %v438_v42 = vsel %vm406_vm2, %v328_v31, %v422_v38  ;;  %v439_v59 = vsel %vm407_vm3, %v329_v32, %v423_v39  ;;  %vm409_vm5 = vcmp.gt.f32.partialorder %v331_v35, 0.0  ;;  %v426_v62 = vmul.f32 0.1, %v332_v36 }
 0x15b   :  { %1274 = vmatprep.mubr.msk.f32.mxu1 %vm264_vm1, %v438_v42  ;;  %v440_v61 = vsel %vm408_vm4, %v330_v33, %v424_v5  ;;  %v334_v63 = vmul.f32 %v1349_v27, %v1712_v3  ;;  %v391_v1 = vrot.slane %v390_v43, 2  ;;  %vm410_vm6 = vcmp.gt.f32.partialorder %v332_v36, 0.0 }
 0x15c   :  { %1275 = vmatmul.mubr.msk.f32.vlgmr.msra.gmra.mrb[8].mxu1 %vm264_vm1, %v439_v59  ;;  %v441_v46 = vsel %vm409_vm5, %v331_v35, %v425_v60  ;;  %v427_v47 = vmul.f32 0.1, %v333_v37  ;;  %v442_v48 = vsel %vm410_vm6, %v332_v36, %v426_v62  ;;  %vm411_vm7 = vcmp.gt.f32.partialorder %v333_v37, 0.0 }
 0x15d   :  { %1277 = vmatprep.mubr.msk.f32.mxu1 %vm264_vm1, %v440_v61  ;;  %v392_v45 = vadd.f32 %v391_v1, %v390_v43  ;;  %v428_v49 = vmul.f32 0.1, %v334_v63  ;;  %vm412_vm8 = vcmp.gt.f32.partialorder %v334_v63, 0.0  ;;  %v429_v54 = vmul.f32 0.1, %v335_v30 }
 0x15e   :  { %v443_v53 = vsel %vm411_vm7, %v333_v37, %v427_v47  ;;  %vm413_vm9 = vcmp.gt.f32.partialorder %v335_v30, 0.0  ;;  %vm655_vm3 = vcmask 523264  }
 0x15f   :  { %v393_v50 = vrot.slane %v392_v45, 1  ;;  %v444_v3 = vsel %vm412_vm8, %v334_v63, %v428_v49  ;;  %v445_v44 = vsel %vm413_vm9, %v335_v30, %v429_v54 }
 0x160   :  { %1278 = vmatmul.mubr.msk.f32.gmra.mrb[10].mxu1 %vm264_vm1, %v441_v46 }
 0x161   :  { %1280 = vmatprep.mubr.msk.f32.mxu1 %vm264_vm1, %v442_v48  ;;  %v394_v52 = vadd.f32 %v393_v50, %v392_v45 }
 0x163   :  { %v395_v55 = vmul.f32 0.015625, %v394_v52 }
 0x164   :  { %1281 = vmatmul.mubr.msk.f32.gmra.mrb[12].mxu1 %vm264_vm1, %v443_v53 }
 0x165   :  { %1283 = vmatprep.mubr.msk.f32.mxu1 %vm264_vm1, %v444_v3  ;;  %v396_v4 = vadd.f32 1e-05, %v395_v55 }
 0x167   :  { %1350 = vrsqrt.f32 %v396_v4 }
 0x168   :  { %1284 = vmatmul.mubr.msk.f32.gmra.mrb[14].mxu1 %vm264_vm1, %v445_v44 }
 0x171   :  { %v1351_v51 = vpop.eup %1350 }
 0x172   :  { %v405_v57 = vmul.f32 %v1351_v51, %v1770_v40  ;;  %v398_v2 = vmul.f32 %v1351_v51, %v1750_v56  ;;  %v399_v8 = vmul.f32 %v1351_v51, %v1753_v58  ;;  %v400_v11 = vmul.f32 %v1351_v51, %v1756_v6 }
 0x173   :  { %v401_v14 = vmul.f32 %v1351_v51, %v1758_v0  ;;  %v402_v20 = vmul.f32 %v1351_v51, %v1761_v7  ;;  %v403_v12 = vmul.f32 %v1351_v51, %v1764_v9  ;;  %v404_v13 = vmul.f32 %v1351_v51, %v1767_v10 }
 0x174   :  { %vm414_vm10 = vcmp.gt.f32.partialorder %v398_v2, 0.0  ;;  %v430_v15 = vmul.f32 0.1, %v398_v2  ;;  %vm415_vm11 = vcmp.gt.f32.partialorder %v399_v8, 0.0  ;;  %v431_v16 = vmul.f32 0.1, %v399_v8 }
 0x175   :  { %vm416_vm12 = vcmp.gt.f32.partialorder %v400_v11, 0.0  ;;  %v432_v40 = vmul.f32 0.1, %v400_v11  ;;  %v433_v58 = vmul.f32 0.1, %v401_v14  ;;  %vm417_vm13 = vcmp.gt.f32.partialorder %v401_v14, 0.0 }
 0x176   :  { %v446_v17 = vsel %vm414_vm10, %v398_v2, %v430_v15  ;;  %v447_v56 = vsel %vm415_vm11, %v399_v8, %v431_v16  ;;  %v434_v0 = vmul.f32 0.1, %v402_v20  ;;  %vm418_vm14 = vcmp.gt.f32.partialorder %v402_v20, 0.0 }
 0x177   :  { %1286 = vmatprep.mubr.msk.f32.mxu1 %vm264_vm1, %v446_v17  ;;  %v448_v6 = vsel %vm416_vm12, %v400_v11, %v432_v40  ;;  %v449_v7 = vsel %vm417_vm13, %v401_v14, %v433_v58  ;;  %v435_v9 = vmul.f32 0.1, %v403_v12  ;;  %vm419_vm15 = vcmp.gt.f32.partialorder %v403_v12, 0.0 }
 0x178   :  { %1287 = vmatmul.mubr.msk.f32.gmra.mrb[16].mxu1 %vm264_vm1, %v447_v56  ;;  %v450_v10 = vsel %vm418_vm14, %v402_v20, %v434_v0  ;;  %v436_v18 = vmul.f32 0.1, %v404_v13  ;;  %vm420_vm0 = vcmp.gt.f32.partialorder %v404_v13, 0.0  ;;  %v437_v21 = vmul.f32 0.1, %v405_v57 }
 0x179   :  { %1289 = vmatprep.mubr.msk.f32.mxu1 %vm264_vm1, %v448_v6  ;;  %v451_v19 = vsel %vm419_vm15, %v403_v12, %v435_v9  ;;  %vm421_vm2 = vcmp.gt.f32.partialorder %v405_v57, 0.0 }
 0x17a   :  { %v452_v22 = vsel %vm420_vm0, %v404_v13, %v436_v18  ;;  %v453_v23 = vsel %vm421_vm2, %v405_v57, %v437_v21 }
 0x17c   :  { %1290 = vmatmul.mubr.msk.f32.gmra.mrb[18].mxu1 %vm264_vm1, %v449_v7 }
 0x17d   :  { %1292 = vmatprep.mubr.msk.f32.mxu1 %vm264_vm1, %v450_v10 }
 0x180   :  { %1293 = vmatmul.mubr.msk.f32.gmra.mrb[20].mxu1 %vm264_vm1, %v451_v19 }
 0x181   :  { %1295 = vmatprep.mubr.msk.f32.mxu1 %vm264_vm1, %v452_v22 }
 0x184   :  { %1296 = vmatmul.mubr.msk.f32.gmra.mrb[22].mxu1 %vm264_vm1, %v453_v23 }
 0x22f   :  { %v1276_v25 = vpop.f32.mrb[8].mxu1 }
 0x230   :  { %v1831_v26 = vadd.f32 %v1276_v25, %v1230_v24  ;;  %v576_v27 = vpop.f32.mrb[9].mxu1 }
 0x231   :  { %v1833_v28 = vadd.f32 %v1230_v24, %v576_v27 }
 0x232   :  { %v659_v29 = vsel %vm655_vm3, %v1831_v26, 0.0 }
 0x233   :  { %660 = vadd.xlane.f32.xlu0 %v659_v29  ;;  %v1279_v30 = vpop.f32.mrb[10].mxu1  ;;  %v656_v35 = vsel %vm655_vm3, %v1833_v28, 0.0 }
 0x234   :  { %v1837_v31 = vadd.f32 %v1279_v30, %v1230_v24  ;;  %v586_v32 = vpop.f32.mrb[11].mxu1 }
 0x235   :  { %v1839_v33 = vadd.f32 %v1230_v24, %v586_v32 }
 0x236   :  { %v665_v34 = vsel %vm655_vm3, %v1837_v31, 0.0 }
 0x237   :  { %666 = vadd.xlane.f32.xlu1 %v665_v34  ;;  %v1282_v36 = vpop.f32.mrb[12].mxu1  ;;  %657 = vadd.xlane.f32.xlu0 %v656_v35  ;;  %v662_v41 = vsel %vm655_vm3, %v1839_v33, 0.0 }
 0x238   :  { %v596_v37 = vpop.f32.mrb[13].mxu1  ;;  %v1847_v39 = vadd.f32 %v1282_v36, %v1230_v24 }
 0x239   :  { %v1845_v38 = vadd.f32 %v1230_v24, %v596_v37 }
 0x23a   :  { %v671_v61 = vsel %vm655_vm3, %v1847_v39, 0.0 }
 0x23b   :  { %v1285_v5 = vpop.f32.mrb[14].mxu1  ;;  %663 = vadd.xlane.f32.xlu1 %v662_v41  ;;  %v668_v42 = vsel %vm655_vm3, %v1845_v38, 0.0 }
 0x23c   :  { %v606_v59 = vpop.f32.mrb[15].mxu1  ;;  %669 = vadd.xlane.f32.xlu0 %v668_v42  ;;  %v1855_v60 = vadd.f32 %v1285_v5, %v1230_v24 }
 0x23d   :  { %v1853_v43 = vadd.f32 %v1230_v24, %v606_v59 }
 0x23e   :  { %v677_v63 = vsel %vm655_vm3, %v1855_v60, 0.0 }
 0x23f   :  { %672 = vadd.xlane.f32.xlu1 %v671_v61  ;;  %v674_v62 = vsel %vm655_vm3, %v1853_v43, 0.0 }
 0x240   :  { %675 = vadd.xlane.f32.xlu0 %v674_v62 }
 0x243   :  { %678 = vadd.xlane.f32.xlu1 %v677_v63 }
 0x24b   :  { %v1288_v1 = vpop.f32.mrb[16].mxu1 }
 0x24c   :  { %v1863_v45 = vadd.f32 %v1288_v1, %v1230_v24  ;;  %v616_v46 = vpop.f32.mrb[17].mxu1 }
 0x24d   :  { %v1865_v47 = vadd.f32 %v1230_v24, %v616_v46 }
 0x24e   :  { %v683_v48 = vsel %vm655_vm3, %v1863_v45, 0.0 }
 0x24f   :  { %684 = vadd.xlane.f32.xlu1 %v683_v48  ;;  %v1291_v49 = vpop.f32.mrb[18].mxu1  ;;  %v680_v50 = vsel %vm655_vm3, %v1865_v47, 0.0 }
 0x250   :  { %v1871_v52 = vadd.f32 %v1291_v49, %v1230_v24  ;;  %v626_v53 = vpop.f32.mrb[19].mxu1  ;;  %681 = vadd.xlane.f32.xlu0 %v680_v50 }
 0x251   :  { %v1873_v54 = vadd.f32 %v1230_v24, %v626_v53 }
 0x252   :  { %v689_v3 = vsel %vm655_vm3, %v1871_v52, 0.0 }
 0x253   :  { %690 = vadd.xlane.f32.xlu1 %v689_v3  ;;  %v1294_v55 = vpop.f32.mrb[20].mxu1  ;;  %v686_v4 = vsel %vm655_vm3, %v1873_v54, 0.0 }
 0x254   :  { %v1879_v44 = vadd.f32 %v1294_v55, %v1230_v24  ;;  %v636_v51 = vpop.f32.mrb[21].mxu1  ;;  %687 = vadd.xlane.f32.xlu0 %v686_v4 }
 0x255   :  { %v1881_v57 = vadd.f32 %v1230_v24, %v636_v51 }
 0x256   :  { %v695_v2 = vsel %vm655_vm3, %v1879_v44, 0.0 }
 0x257   :  { %696 = vadd.xlane.f32.xlu1 %v695_v2  ;;  %v1297_v8 = vpop.f32.mrb[22].mxu1  ;;  %v692_v11 = vsel %vm655_vm3, %v1881_v57, 0.0 }
 0x258   :  { %v1887_v14 = vadd.f32 %v1297_v8, %v1230_v24  ;;  %v646_v20 = vpop.f32.mrb[23].mxu1  ;;  %693 = vadd.xlane.f32.xlu0 %v692_v11 }
 0x259   :  { %v1889_v12 = vadd.f32 %v1230_v24, %v646_v20 }
 0x25a   :  { %v701_v13 = vsel %vm655_vm3, %v1887_v14, 0.0 }
 0x25b   :  { %702 = vadd.xlane.f32.xlu1 %v701_v13  ;;  %v698_v15 = vsel %vm655_vm3, %v1889_v12, 0.0 }
 0x25c   :  { %699 = vadd.xlane.f32.xlu0 %v698_v15 }
 0x2c0   :  { %v661_v16 = vpop.xlane.xlu0 %660 }
 0x2c1   :  { %v705_v40 = vmul.f32 0.015625, %v661_v16 }
 0x2c3   :  { %v1896_v17 = vsub.f32 %v1831_v26, %v705_v40 }
 0x2c4   :  { %v667_v56 = vpop.xlane.xlu1 %666  ;;  %v658_v58 = vpop.xlane.xlu0 %657 }
 0x2c5   :  { %v707_v6 = vmul.f32 0.015625, %v667_v56  ;;  %v704_v0 = vmul.f32 0.015625, %v658_v58  ;;  %v737_v7 = vmul.f32 %v1896_v17, %v1896_v17 }
 0x2c7   :  { %v1901_v9 = vsub.f32 %v1837_v31, %v707_v6  ;;  %v1904_v10 = vsub.f32 %v1833_v28, %v704_v0  ;;  %v755_v18 = vsel %vm655_vm3, %v737_v7, 0.0 }
 0x2c8   :  { %v664_v19 = vpop.xlane.xlu1 %663  ;;  %756 = vadd.xlane.f32.xlu1 %v755_v18 }
 0x2c9   :  { %v706_v21 = vmul.f32 0.015625, %v664_v19  ;;  %v670_v22 = vpop.xlane.xlu0 %669  ;;  %v739_v23 = vmul.f32 %v1901_v9, %v1901_v9  ;;  %v736_v24 = vmul.f32 %v1904_v10, %v1904_v10 }
 0x2ca   :  { %v708_v25 = vmul.f32 0.015625, %v670_v22 }
 0x2cb   :  { %v1912_v26 = vsub.f32 %v1839_v33, %v706_v21  ;;  %v761_v27 = vsel %vm655_vm3, %v739_v23, 0.0  ;;  %v752_v28 = vsel %vm655_vm3, %v736_v24, 0.0 }
 0x2cc   :  { %v1917_v29 = vsub.f32 %v1845_v38, %v708_v25  ;;  %v673_v30 = vpop.xlane.xlu1 %672  ;;  %762 = vadd.xlane.f32.xlu1 %v761_v27  ;;  %753 = vadd.xlane.f32.xlu0 %v752_v28 }
 0x2cd   :  { %v709_v31 = vmul.f32 0.015625, %v673_v30  ;;  %v676_v32 = vpop.xlane.xlu0 %675  ;;  %v738_v34 = vmul.f32 %v1912_v26, %v1912_v26 }
 0x2ce   :  { %v710_v35 = vmul.f32 0.015625, %v676_v32  ;;  %v740_v37 = vmul.f32 %v1917_v29, %v1917_v29 }
 0x2cf   :  { %v1922_v36 = vsub.f32 %v1847_v39, %v709_v31  ;;  %v758_v33 = vsel %vm655_vm3, %v738_v34, 0.0 }
 0x2d0   :  { %v1928_v38 = vsub.f32 %v1853_v43, %v710_v35  ;;  %v679_v41 = vpop.xlane.xlu1 %678  ;;  %759 = vadd.xlane.f32.xlu0 %v758_v33  ;;  %v764_v61 = vsel %vm655_vm3, %v740_v37, 0.0 }
 0x2d1   :  { %v711_v5 = vmul.f32 0.015625, %v679_v41  ;;  %v741_v42 = vmul.f32 %v1922_v36, %v1922_v36 }
 0x2d2   :  { %v742_v62 = vmul.f32 %v1928_v38, %v1928_v38 }
 0x2d3   :  { %v1933_v59 = vsub.f32 %v1855_v60, %v711_v5  ;;  %v767_v39 = vsel %vm655_vm3, %v741_v42, 0.0 }
 0x2d4   :  { %768 = vadd.xlane.f32.xlu1 %v767_v39  ;;  %765 = vadd.xlane.f32.xlu0 %v764_v61  ;;  %v770_v1 = vsel %vm655_vm3, %v742_v62, 0.0 }
 0x2d5   :  { %v743_v43 = vmul.f32 %v1933_v59, %v1933_v59 }
 0x2d7   :  { %v773_v63 = vsel %vm655_vm3, %v743_v43, 0.0 }
 0x2d8   :  { %774 = vadd.xlane.f32.xlu1 %v773_v63  ;;  %771 = vadd.xlane.f32.xlu0 %v770_v1 }
 0x2dc   :  { %v685_v60 = vpop.xlane.xlu1 %684 }
 0x2dd   :  { %v713_v46 = vmul.f32 0.015625, %v685_v60  ;;  %v682_v48 = vpop.xlane.xlu0 %681 }
 0x2de   :  { %v712_v49 = vmul.f32 0.015625, %v682_v48 }
 0x2df   :  { %v1944_v50 = vsub.f32 %v1863_v45, %v713_v46  ;;  %v1994_v46 = vld [vmem:[%s2324_s4 + $0x1] ss:$0 sm:$0xff] }
 0x2e0   :  { %v1947_v53 = vsub.f32 %v1865_v47, %v712_v49  ;;  %v691_v3 = vpop.xlane.xlu1 %690 }
 0x2e1   :  { %v715_v55 = vmul.f32 0.015625, %v691_v3  ;;  %v688_v4 = vpop.xlane.xlu0 %687  ;;  %v745_v51 = vmul.f32 %v1944_v50, %v1944_v50 }
 0x2e2   :  { %v714_v2 = vmul.f32 0.015625, %v688_v4  ;;  %v744_v8 = vmul.f32 %v1947_v53, %v1947_v53 }
 0x2e3   :  { %v1954_v11 = vsub.f32 %v1871_v52, %v715_v55  ;;  %v779_v20 = vsel %vm655_vm3, %v745_v51, 0.0  ;;  %v2000_v51 = vld [vmem:[%s2324_s4 + $0x2] ss:$0 sm:$0xff] }
 0x2e4   :  { %v1958_v45 = vsub.f32 %v1873_v54, %v714_v2  ;;  %v697_v47 = vpop.xlane.xlu1 %696  ;;  %780 = vadd.xlane.f32.xlu1 %v779_v20  ;;  %v776_v13 = vsel %vm655_vm3, %v744_v8, 0.0 }
 0x2e5   :  { %v717_v15 = vmul.f32 0.015625, %v697_v47  ;;  %777 = vadd.xlane.f32.xlu0 %v776_v13  ;;  %v694_v16 = vpop.xlane.xlu0 %693  ;;  %v747_v40 = vmul.f32 %v1954_v11, %v1954_v11 }
 0x2e6   :  { %v716_v56 = vmul.f32 0.015625, %v694_v16  ;;  %v746_v52 = vmul.f32 %v1958_v45, %v1958_v45 }
 0x2e7   :  { %v1966_v58 = vsub.f32 %v1879_v44, %v717_v15  ;;  %v785_v54 = vsel %vm655_vm3, %v747_v40, 0.0 }
 0x2e8   :  { %v1970_v6 = vsub.f32 %v1881_v57, %v716_v56  ;;  %786 = vadd.xlane.f32.xlu1 %v785_v54  ;;  %v703_v0 = vpop.xlane.xlu1 %702  ;;  %v782_v7 = vsel %vm655_vm3, %v746_v52, 0.0 }
 0x2e9   :  { %v719_v18 = vmul.f32 0.015625, %v703_v0  ;;  %783 = vadd.xlane.f32.xlu0 %v782_v7  ;;  %v700_v19 = vpop.xlane.xlu0 %699  ;;  %v749_v21 = vmul.f32 %v1966_v58, %v1966_v58 }
 0x2ea   :  { %v718_v22 = vmul.f32 0.015625, %v700_v19  ;;  %v748_v44 = vmul.f32 %v1970_v6, %v1970_v6 }
 0x2eb   :  { %v1978_v23 = vsub.f32 %v1887_v14, %v719_v18  ;;  %v791_v57 = vsel %vm655_vm3, %v749_v21, 0.0 }
 0x2ec   :  { %v1982_v24 = vsub.f32 %v1889_v12, %v718_v22  ;;  %792 = vadd.xlane.f32.xlu1 %v791_v57  ;;  %v788_v25 = vsel %vm655_vm3, %v748_v44, 0.0 }
 0x2ed   :  { %789 = vadd.xlane.f32.xlu0 %v788_v25  ;;  %v751_v27 = vmul.f32 %v1978_v23, %v1978_v23 }
 0x2ee   :  { %v750_v28 = vmul.f32 %v1982_v24, %v1982_v24 }
 0x2ef   :  { %v797_v30 = vsel %vm655_vm3, %v751_v27, 0.0 }
 0x2f0   :  { %798 = vadd.xlane.f32.xlu1 %v797_v30  ;;  %v794_v14 = vsel %vm655_vm3, %v750_v28, 0.0 }
 0x2f1   :  { %795 = vadd.xlane.f32.xlu0 %v794_v14 }
 0x355   :  { %v757_v31 = vpop.xlane.xlu1 %756 }
 0x356   :  { %v801_v32 = vmul.f32 0.015625, %v757_v31 }
 0x358   :  { %v817_v12 = vadd.f32 1e-05, %v801_v32 }
 0x359   :  { %v763_v34 = vpop.xlane.xlu1 %762  ;;  %v754_v35 = vpop.xlane.xlu0 %753 }
 0x35a   :  { %1352 = vrsqrt.f32 %v817_v12  ;;  %v803_v33 = vmul.f32 0.015625, %v763_v34  ;;  %v800_v37 = vmul.f32 0.015625, %v754_v35 }
 0x35c   :  { %v819_v41 = vadd.f32 1e-05, %v803_v33  ;;  %v816_v5 = vadd.f32 1e-05, %v800_v37 }
 0x35d   :  { %v760_v42 = vpop.xlane.xlu0 %759 }
 0x35e   :  { %1354 = vrsqrt.f32 %v819_v41  ;;  %v802_v39 = vmul.f32 0.015625, %v760_v42 }
 0x35f   :  { %1356 = vrsqrt.f32 %v816_v5 }
 0x360   :  { %v818_v61 = vadd.f32 1e-05, %v802_v39 }
 0x361   :  { %v769_v62 = vpop.xlane.xlu1 %768  ;;  %v766_v43 = vpop.xlane.xlu0 %765 }
 0x362   :  { %1358 = vrsqrt.f32 %v818_v61  ;;  %v805_v63 = vmul.f32 0.015625, %v769_v62  ;;  %v804_v1 = vmul.f32 0.015625, %v766_v43 }
 0x364   :  { %v1353_v60 = vpop.eup %1352  ;;  %v821_v48 = vadd.f32 1e-05, %v805_v63  ;;  %v820_v49 = vadd.f32 1e-05, %v804_v1 }
 0x365   :  { %v775_v3 = vpop.xlane.xlu1 %774  ;;  %v772_v55 = vpop.xlane.xlu0 %771  ;;  %v849_v4 = vmul.f32 %v1353_v60, %v1896_v17 }
 0x366   :  { %1360 = vrsqrt.f32 %v821_v48  ;;  %v807_v2 = vmul.f32 0.015625, %v775_v3  ;;  %v806_v8 = vmul.f32 0.015625, %v772_v55 }
 0x367   :  { %1362 = vrsqrt.f32 %v820_v49  ;;  %v870_v20 = vmul.f32 %v1994_v46, %v849_v4 }
 0x368   :  { %v1355_v47 = vpop.eup %1354  ;;  %v823_v13 = vadd.f32 1e-05, %v807_v2  ;;  %v822_v15 = vadd.f32 1e-05, %v806_v8 }
 0x369   :  { %v1357_v16 = vpop.eup %1356  ;;  %v891_v40 = vadd.f32 %v2000_v51, %v870_v20  ;;  %v851_v56 = vmul.f32 %v1355_v47, %v1901_v9 }
 0x36a   :  { %1364 = vrsqrt.f32 %v823_v13  ;;  %v848_v17 = vmul.f32 %v1357_v16, %v1904_v10 }
 0x36b   :  { %1366 = vrsqrt.f32 %v822_v15  ;;  %vm907_vm1 = vcmp.gt.f32.partialorder %v891_v40, 0.0  ;;  %v923_v52 = vmul.f32 0.1, %v891_v40  ;;  %v872_v54 = vmul.f32 %v1994_v46, %v851_v56 }
 0x36c   :  { %v1359_v0 = vpop.eup %1358  ;;  %v869_v7 = vmul.f32 %v1994_v46, %v848_v17 }
 0x36d   :  { %v2008_v18 = vsel %vm907_vm1, %v891_v40, %v923_v52  ;;  %v893_v19 = vadd.f32 %v2000_v51, %v872_v54  ;;  %v850_v21 = vmul.f32 %v1359_v0, %v1912_v26 }
 0x36e   :  { %v957_v9 = vsel %vm655_vm3, %v2008_v18, -inf  ;;  %v890_v22 = vadd.f32 %v2000_v51, %v869_v7 }
 0x36f   :  { %958 = vmax.xlane.f32.xlu1 %v957_v9  ;;  %vm909_vm4 = vcmp.gt.f32.partialorder %v893_v19, 0.0  ;;  %v925_v10 = vmul.f32 0.1, %v893_v19  ;;  %v871_v44 = vmul.f32 %v1994_v46, %v850_v21 }
 0x370   :  { %v1361_v57 = vpop.eup %1360  ;;  %vm906_vm5 = vcmp.gt.f32.partialorder %v890_v22, 0.0  ;;  %v922_v25 = vmul.f32 0.1, %v890_v22 }
 0x371   :  { %v1363_v27 = vpop.eup %1362  ;;  %v2016_v28 = vsel %vm909_vm4, %v893_v19, %v925_v10  ;;  %v892_v30 = vadd.f32 %v2000_v51, %v871_v44  ;;  %v853_v26 = vmul.f32 %v1361_v57, %v1922_v36  ;;  %v781_v12 = vpop.xlane.xlu1 %780 }
 0x372   :  { %v963_v14 = vsel %vm655_vm3, %v2016_v28, -inf  ;;  %v2022_v31 = vsel %vm906_vm5, %v890_v22, %v922_v25  ;;  %v852_v32 = vmul.f32 %v1363_v27, %v1917_v29  ;;  %v809_v41 = vmul.f32 0.015625, %v781_v12  ;;  %v778_v5 = vpop.xlane.xlu0 %777 }
 0x373   :  { %964 = vmax.xlane.f32.xlu1 %v963_v14  ;;  %v954_v34 = vsel %vm655_vm3, %v2022_v31, -inf  ;;  %vm908_vm6 = vcmp.gt.f32.partialorder %v892_v30, 0.0  ;;  %v924_v35 = vmul.f32 0.1, %v892_v30  ;;  %v874_v33 = vmul.f32 %v1994_v46, %v853_v26 }
 0x374   :  { %v1365_v37 = vpop.eup %1364  ;;  %955 = vmax.xlane.f32.xlu0 %v954_v34  ;;  %v873_v36 = vmul.f32 %v1994_v46, %v852_v32  ;;  %v808_v39 = vmul.f32 0.015625, %v778_v5  ;;  %v825_v43 = vadd.f32 1e-05, %v809_v41 }
 0x375   :  { %v1367_v42 = vpop.eup %1366  ;;  %v2029_v61 = vsel %vm908_vm6, %v892_v30, %v924_v35  ;;  %v895_v29 = vadd.f32 %v2000_v51, %v874_v33  ;;  %v855_v62 = vmul.f32 %v1365_v37, %v1933_v59  ;;  %v787_v49 = vpop.xlane.xlu1 %786 }
 0x376   :  { %v960_v63 = vsel %vm655_vm3, %v2029_v61, -inf  ;;  %v894_v1 = vadd.f32 %v2000_v51, %v873_v36  ;;  %v854_v60 = vmul.f32 %v1367_v42, %v1928_v38  ;;  %v824_v48 = vadd.f32 1e-05, %v808_v39  ;;  %v784_v2 = vpop.xlane.xlu0 %783 }
 0x377   :  { %vm911_vm7 = vcmp.gt.f32.partialorder %v895_v29, 0.0  ;;  %v927_v3 = vmul.f32 0.1, %v895_v29  ;;  %v876_v55 = vmul.f32 %v1994_v46, %v855_v62  ;;  %1368 = vrsqrt.f32 %v825_v43 }
 0x378   :  { %v811_v4 = vmul.f32 0.015625, %v787_v49  ;;  %961 = vmax.xlane.f32.xlu0 %v960_v63  ;;  %vm910_vm8 = vcmp.gt.f32.partialorder %v894_v1, 0.0  ;;  %v926_v59 = vmul.f32 0.1, %v894_v1  ;;  %1370 = vrsqrt.f32 %v824_v48 }
 0x379   :  { %v810_v8 = vmul.f32 0.015625, %v784_v2  ;;  %v2038_v20 = vsel %vm911_vm7, %v895_v29, %v927_v3  ;;  %v897_v47 = vadd.f32 %v2000_v51, %v876_v55  ;;  %v875_v16 = vmul.f32 %v1994_v46, %v854_v60  ;;  %v793_v56 = vpop.xlane.xlu1 %792 }
 0x37a   :  { %v827_v13 = vadd.f32 1e-05, %v811_v4  ;;  %v969_v38 = vsel %vm655_vm3, %v2038_v20, -inf  ;;  %v2043_v15 = vsel %vm910_vm8, %v894_v1, %v926_v59  ;;  %v813_v54 = vmul.f32 0.015625, %v793_v56  ;;  %v790_v0 = vpop.xlane.xlu0 %789 }
 0x37b   :  { %v826_v40 = vadd.f32 1e-05, %v810_v8  ;;  %970 = vmax.xlane.f32.xlu1 %v969_v38  ;;  %v966_v17 = vsel %vm655_vm3, %v2043_v15, -inf  ;;  %vm913_vm9 = vcmp.gt.f32.partialorder %v897_v47, 0.0  ;;  %v929_v52 = vmul.f32 0.1, %v897_v47 }
 0x37c   :  { %1372 = vrsqrt.f32 %v827_v13  ;;  %967 = vmax.xlane.f32.xlu0 %v966_v17  ;;  %v896_v7 = vadd.f32 %v2000_v51, %v875_v16  ;;  %v812_v19 = vmul.f32 0.015625, %v790_v0  ;;  %v829_v9 = vadd.f32 1e-05, %v813_v54 }
 0x37d   :  { %1374 = vrsqrt.f32 %v826_v40  ;;  %v2049_v21 = vsel %vm913_vm9, %v897_v47, %v929_v52  ;;  %v799_v57 = vpop.xlane.xlu1 %798 }
 0x37e   :  { %v975_v22 = vsel %vm655_vm3, %v2049_v21, -inf  ;;  %vm912_vm10 = vcmp.gt.f32.partialorder %v896_v7, 0.0  ;;  %v928_v10 = vmul.f32 0.1, %v896_v7  ;;  %v828_v44 = vadd.f32 1e-05, %v812_v19  ;;  %v796_v27 = vpop.xlane.xlu0 %795 }
 0x37f   :  { %976 = vmax.xlane.f32.xlu1 %v975_v22  ;;  %1376 = vrsqrt.f32 %v829_v9  ;;  %v815_v25 = vmul.f32 0.015625, %v799_v57  ;;  %v814_v26 = vmul.f32 0.015625, %v796_v27 }
 0x380   :  { %v2053_v30 = vsel %vm912_vm10, %v896_v7, %v928_v10  ;;  %1378 = vrsqrt.f32 %v828_v44 }
 0x381   :  { %v972_v14 = vsel %vm655_vm3, %v2053_v30, -inf  ;;  %v1369_v32 = vpop.eup %1368  ;;  %v831_v12 = vadd.f32 1e-05, %v815_v25  ;;  %v830_v35 = vadd.f32 1e-05, %v814_v26 }
 0x382   :  { %973 = vmax.xlane.f32.xlu0 %v972_v14  ;;  %v1371_v34 = vpop.eup %1370  ;;  %v857_v33 = vmul.f32 %v1369_v32, %v1944_v50 }
 0x383   :  { %1380 = vrsqrt.f32 %v831_v12  ;;  %v856_v37 = vmul.f32 %v1371_v34, %v1947_v53 }
 0x384   :  { %1382 = vrsqrt.f32 %v830_v35  ;;  %v878_v41 = vmul.f32 %v1994_v46, %v857_v33 }
 0x385   :  { %v877_v36 = vmul.f32 %v1994_v46, %v856_v37 }
 0x386   :  { %v1373_v5 = vpop.eup %1372  ;;  %v899_v39 = vadd.f32 %v2000_v51, %v878_v41 }
 0x387   :  { %v1375_v42 = vpop.eup %1374  ;;  %v859_v29 = vmul.f32 %v1373_v5, %v1954_v11  ;;  %v898_v62 = vadd.f32 %v2000_v51, %v877_v36 }
 0x388   :  { %v858_v43 = vmul.f32 %v1375_v42, %v1958_v45  ;;  %vm915_vm11 = vcmp.gt.f32.partialorder %v899_v39, 0.0  ;;  %v931_v50 = vmul.f32 0.1, %v899_v39 }
 0x389   :  { %v880_v63 = vmul.f32 %v1994_v46, %v859_v29  ;;  %v1377_v53 = vpop.eup %1376  ;;  %vm914_vm12 = vcmp.gt.f32.partialorder %v898_v62, 0.0  ;;  %v930_v1 = vmul.f32 0.1, %v898_v62 }
 0x38a   :  { %v879_v60 = vmul.f32 %v1994_v46, %v858_v43  ;;  %v1379_v48 = vpop.eup %1378  ;;  %v2067_v49 = vsel %vm915_vm11, %v899_v39, %v931_v50  ;;  %v861_v11 = vmul.f32 %v1377_v53, %v1966_v58 }
 0x38b   :  { %v901_v3 = vadd.f32 %v2000_v51, %v880_v63  ;;  %v981_v55 = vsel %vm655_vm3, %v2067_v49, -inf  ;;  %v2073_v45 = vsel %vm914_vm12, %v898_v62, %v930_v1  ;;  %v860_v2 = vmul.f32 %v1379_v48, %v1970_v6 }
 0x38c   :  { %v900_v4 = vadd.f32 %v2000_v51, %v879_v60  ;;  %982 = vmax.xlane.f32.xlu1 %v981_v55  ;;  %v978_v59 = vsel %vm655_vm3, %v2073_v45, -inf  ;;  %v882_v47 = vmul.f32 %v1994_v46, %v861_v11 }
 0x38d   :  { %vm917_vm13 = vcmp.gt.f32.partialorder %v901_v3, 0.0  ;;  %v933_v8 = vmul.f32 0.1, %v901_v3  ;;  %v1381_v13 = vpop.eup %1380  ;;  %979 = vmax.xlane.f32.xlu0 %v978_v59  ;;  %v881_v38 = vmul.f32 %v1994_v46, %v860_v2 }
 0x38e   :  { %vm916_vm14 = vcmp.gt.f32.partialorder %v900_v4, 0.0  ;;  %v932_v58 = vmul.f32 0.1, %v900_v4  ;;  %v1383_v16 = vpop.eup %1382  ;;  %v903_v56 = vadd.f32 %v2000_v51, %v882_v47  ;;  %v863_v6 = vmul.f32 %v1381_v13, %v1978_v23 }
 0x38f   :  { %v2081_v40 = vsel %vm917_vm13, %v901_v3, %v933_v8  ;;  %v902_v54 = vadd.f32 %v2000_v51, %v881_v38  ;;  %v862_v0 = vmul.f32 %v1383_v16, %v1982_v24 }
 0x390   :  { %v987_v17 = vsel %vm655_vm3, %v2081_v40, -inf  ;;  %v2087_v52 = vsel %vm916_vm14, %v900_v4, %v932_v58  ;;  %vm919_vm15 = vcmp.gt.f32.partialorder %v903_v56, 0.0  ;;  %v935_v19 = vmul.f32 0.1, %v903_v56 }
 0x391   :  { %988 = vmax.xlane.f32.xlu1 %v987_v17  ;;  %v984_v7 = vsel %vm655_vm3, %v2087_v52, -inf  ;;  %v884_v9 = vmul.f32 %v1994_v46, %v863_v6  ;;  %vm918_vm0 = vcmp.gt.f32.partialorder %v902_v54, 0.0  ;;  %v934_v23 = vmul.f32 0.1, %v902_v54 }
 0x392   :  { %985 = vmax.xlane.f32.xlu0 %v984_v7  ;;  %v883_v22 = vmul.f32 %v1994_v46, %v862_v0  ;;  %v2095_v10 = vsel %vm919_vm15, %v903_v56, %v935_v19 }
 0x393   :  { %v905_v44 = vadd.f32 %v2000_v51, %v884_v9  ;;  %v993_v24 = vsel %vm655_vm3, %v2095_v10, -inf  ;;  %v2100_v57 = vsel %vm918_vm0, %v902_v54, %v934_v23 }
 0x394   :  { %v904_v25 = vadd.f32 %v2000_v51, %v883_v22  ;;  %v990_v27 = vsel %vm655_vm3, %v2100_v57, -inf }
 0x395   :  { %994 = vmax.xlane.f32.xlu1 %v993_v24  ;;  %vm921_vm2 = vcmp.gt.f32.partialorder %v905_v44, 0.0  ;;  %v937_v26 = vmul.f32 0.1, %v905_v44 }
 0x396   :  { %991 = vmax.xlane.f32.xlu0 %v990_v27  ;;  %vm920_vm1 = vcmp.gt.f32.partialorder %v904_v25, 0.0  ;;  %v936_v46 = vmul.f32 0.1, %v904_v25 }
 0x397   :  { %v2105_v14 = vsel %vm921_vm2, %v905_v44, %v937_v26 }
 0x398   :  { %v999_v32 = vsel %vm655_vm3, %v2105_v14, -inf  ;;  %v2109_v12 = vsel %vm920_vm1, %v904_v25, %v936_v46 }
 0x399   :  { %1000 = vmax.xlane.f32.xlu1 %v999_v32  ;;  %v996_v51 = vsel %vm655_vm3, %v2109_v12, -inf }
 0x39a   :  { %997 = vmax.xlane.f32.xlu0 %v996_v51 }
 0x3fc   :  { %v959_v34 = vpop.xlane.xlu1 %958 }
 0x3fd   :  { %v1003_v35 = vsub.f32 %v2008_v18, %v959_v34 }
 0x3ff   :  { %v1020_v33 = vmul.f32 1.442695, %v1003_v35 }
 0x400   :  { %v965_v37 = vpop.xlane.xlu1 %964 }
 0x401   :  { %1384 = vpow2.f32 %v1020_v33  ;;  %v1005_v41 = vsub.f32 %v2016_v28, %v965_v37  ;;  %v956_v5 = vpop.xlane.xlu0 %955 }
 0x402   :  { %v1002_v36 = vsub.f32 %v2022_v31, %v956_v5 }
 0x403   :  { %v1024_v42 = vmul.f32 1.442695, %v1005_v41 }
 0x404   :  { %v1018_v39 = vmul.f32 1.442695, %v1002_v36 }
 0x405   :  { %1386 = vpow2.f32 %v1024_v42  ;;  %v962_v29 = vpop.xlane.xlu0 %961 }
 0x406   :  { %1388 = vpow2.f32 %v1018_v39  ;;  %v1004_v62 = vsub.f32 %v2029_v61, %v962_v29 }
 0x408   :  { %v1022_v43 = vmul.f32 1.442695, %v1004_v62  ;;  %v971_v50 = vpop.xlane.xlu1 %970 }
 0x409   :  { %v1007_v63 = vsub.f32 %v2038_v20, %v971_v50  ;;  %v968_v18 = vpop.xlane.xlu0 %967 }
 0x40a   :  { %1390 = vpow2.f32 %v1022_v43  ;;  %v1006_v53 = vsub.f32 %v2043_v15, %v968_v18 }
 0x40b   :  { %v2119_v1 = vpop.eup %1384  ;;  %v1028_v28 = vmul.f32 1.442695, %v1007_v63 }
 0x40c   :  { %v1026_v60 = vmul.f32 1.442695, %v1006_v53  ;;  %v977_v31 = vpop.xlane.xlu1 %976  ;;  %v1053_v48 = vsel %vm655_vm3, %v2119_v1, 0.0 }
 0x40d   :  { %1392 = vpow2.f32 %v1028_v28  ;;  %v1009_v3 = vsub.f32 %v2049_v21, %v977_v31  ;;  %1054 = vadd.xlane.f32.xlu1 %v1053_v48 }
 0x40e   :  { %1394 = vpow2.f32 %v1026_v60 }
 0x40f   :  { %v2124_v61 = vpop.eup %1386  ;;  %v1032_v20 = vmul.f32 1.442695, %v1009_v3  ;;  %v974_v11 = vpop.xlane.xlu0 %973  ;;  %v1131_v3 = vld [vmem:[%s2325_s1 + $0x8] sm:$0xff] }
 0x410   :  { %v2126_v55 = vpop.eup %1388  ;;  %v1008_v15 = vsub.f32 %v2053_v30, %v974_v11  ;;  %v1059_v4 = vsel %vm655_vm3, %v2124_v61, 0.0  ;;  %vm1147_vm4 = vcmp.ge.f32.partialorder %v1131_v3, 0.1 }
 0x411   :  { %1396 = vpow2.f32 %v1032_v20  ;;  %1060 = vadd.xlane.f32.xlu1 %v1059_v4  ;;  %v1050_v2 = vsel %vm655_vm3, %v2126_v55, 0.0 }
 0x412   :  { %v1030_v59 = vmul.f32 1.442695, %v1008_v15  ;;  %1051 = vadd.xlane.f32.xlu0 %v1050_v2 }
 0x414   :  { %v2133_v21 = vpop.eup %1390  ;;  %1398 = vpow2.f32 %v1030_v59  ;;  %v1133_v59 = vld [vmem:[%s2325_s1 + $0x18] sm:$0xff] }
 0x415   :  { %v1056_v8 = vsel %vm655_vm3, %v2133_v21, 0.0  ;;  %vm1149_vm5 = vcmp.ge.f32.partialorder %v1133_v59, 0.1  ;;  %v1140_v59 = vld [vmem:[%s2325_s1 + $0x50] sm:$0xff] }
 0x416   :  { %1057 = vadd.xlane.f32.xlu0 %v1056_v8  ;;  %vm1156_vm15 = vcmp.ge.f32.partialorder %v1140_v59, 0.1 }
 0x417   :  { %v2137_v47 = vpop.eup %1392 }
 0x418   :  { %v2139_v30 = vpop.eup %1394  ;;  %v1065_v13 = vsel %vm655_vm3, %v2137_v47, 0.0 }
 0x419   :  { %1066 = vadd.xlane.f32.xlu1 %v1065_v13  ;;  %v1062_v58 = vsel %vm655_vm3, %v2139_v30, 0.0  ;;  %v983_v38 = vpop.xlane.xlu1 %982  ;;  %v1130_v13 = vld [vmem:[%s2325_s1] sm:$0xff] }
 0x41a   :  { %1063 = vadd.xlane.f32.xlu0 %v1062_v58  ;;  %v1011_v56 = vsub.f32 %v2067_v49, %v983_v38  ;;  %v980_v6 = vpop.xlane.xlu0 %979  ;;  %vm1146_vm6 = vcmp.ge.f32.partialorder %v1130_v13, 0.1 }
 0x41b   :  { %v2145_v16 = vpop.eup %1396  ;;  %v1010_v17 = vsub.f32 %v2073_v45, %v980_v6 }
 0x41c   :  { %v1071_v54 = vsel %vm655_vm3, %v2145_v16, 0.0  ;;  %v1036_v0 = vmul.f32 1.442695, %v1011_v56 }
 0x41d   :  { %1072 = vadd.xlane.f32.xlu1 %v1071_v54  ;;  %v1034_v19 = vmul.f32 1.442695, %v1010_v17 }
 0x41e   :  { %v2151_v7 = vpop.eup %1398  ;;  %v989_v9 = vpop.xlane.xlu1 %988  ;;  %1400 = vpow2.f32 %v1036_v0  ;;  %v1132_v0 = vld [vmem:[%s2325_s1 + $0x10] sm:$0xff] }
 0x41f   :  { %v1013_v23 = vsub.f32 %v2081_v40, %v989_v9  ;;  %v986_v22 = vpop.xlane.xlu0 %985  ;;  %v1068_v44 = vsel %vm655_vm3, %v2151_v7, 0.0  ;;  %1402 = vpow2.f32 %v1034_v19  ;;  %vm1148_vm7 = vcmp.ge.f32.partialorder %v1132_v0, 0.1 }
 0x420   :  { %v1012_v49 = vsub.f32 %v2087_v52, %v986_v22  ;;  %1069 = vadd.xlane.f32.xlu0 %v1068_v44  ;;  %v1135_v22 = vld [vmem:[%s2325_s1 + $0x28] sm:$0xff] }
 0x421   :  { %v1040_v45 = vmul.f32 1.442695, %v1013_v23  ;;  %vm1151_vm8 = vcmp.ge.f32.partialorder %v1135_v22, 0.1 }
 0x422   :  { %v1038_v24 = vmul.f32 1.442695, %v1012_v49  ;;  %v995_v25 = vpop.xlane.xlu1 %994 }
 0x423   :  { %1404 = vpow2.f32 %v1040_v45  ;;  %v1015_v27 = vsub.f32 %v2095_v10, %v995_v25  ;;  %v992_v26 = vpop.xlane.xlu0 %991  ;;  %v1134_v45 = vld [vmem:[%s2325_s1 + $0x20] sm:$0xff] }
 0x424   :  { %1406 = vpow2.f32 %v1038_v24  ;;  %v1014_v46 = vsub.f32 %v2100_v57, %v992_v26  ;;  %vm1150_vm9 = vcmp.ge.f32.partialorder %v1134_v45, 0.1 }
 0x425   :  { %v1044_v32 = vmul.f32 1.442695, %v1015_v27 }
 0x426   :  { %v1042_v40 = vmul.f32 1.442695, %v1014_v46  ;;  %v1001_v51 = vpop.xlane.xlu1 %1000  ;;  %v1137_v46 = vld [vmem:[%s2325_s1 + $0x38] sm:$0xff] }
 0x427   :  { %1408 = vpow2.f32 %v1044_v32  ;;  %v1017_v34 = vsub.f32 %v2105_v14, %v1001_v51  ;;  %v998_v35 = vpop.xlane.xlu0 %997  ;;  %vm1153_vm10 = vcmp.ge.f32.partialorder %v1137_v46, 0.1 }
 0x428   :  { %1410 = vpow2.f32 %v1042_v40  ;;  %v1016_v52 = vsub.f32 %v2109_v12, %v998_v35  ;;  %v2161_v33 = vpop.eup %1400 }
 0x429   :  { %v1048_v37 = vmul.f32 1.442695, %v1017_v34  ;;  %v2163_v41 = vpop.eup %1402  ;;  %v1077_v5 = vsel %vm655_vm3, %v2161_v33, 0.0  ;;  %v1136_v34 = vld [vmem:[%s2325_s1 + $0x30] sm:$0xff] }
 0x42a   :  { %v1046_v10 = vmul.f32 1.442695, %v1016_v52  ;;  %1078 = vadd.xlane.f32.xlu1 %v1077_v5  ;;  %v1074_v57 = vsel %vm655_vm3, %v2163_v41, 0.0  ;;  %vm1152_vm11 = vcmp.ge.f32.partialorder %v1136_v34, 0.1 }
 0x42b   :  { %1412 = vpow2.f32 %v1048_v37  ;;  %1075 = vadd.xlane.f32.xlu0 %v1074_v57 }
 0x42c   :  { %1414 = vpow2.f32 %v1046_v10 }
 0x42d   :  { %v2169_v14 = vpop.eup %1404 }
 0x42e   :  { %v2171_v36 = vpop.eup %1406  ;;  %v1083_v12 = vsel %vm655_vm3, %v2169_v14, 0.0 }
 0x42f   :  { %1084 = vadd.xlane.f32.xlu1 %v1083_v12  ;;  %v1080_v42 = vsel %vm655_vm3, %v2171_v36, 0.0 }
 0x430   :  { %1081 = vadd.xlane.f32.xlu0 %v1080_v42 }
 0x431   :  { %v2177_v39 = vpop.eup %1408 }
 0x432   :  { %v2179_v29 = vpop.eup %1410  ;;  %v1089_v62 = vsel %vm655_vm3, %v2177_v39, 0.0 }
 0x433   :  { %1090 = vadd.xlane.f32.xlu1 %v1089_v62  ;;  %v1086_v43 = vsel %vm655_vm3, %v2179_v29, 0.0 }
 0x434   :  { %1087 = vadd.xlane.f32.xlu0 %v1086_v43 }
 0x435   :  { %v2185_v50 = vpop.eup %1412 }
 0x436   :  { %v2187_v63 = vpop.eup %1414  ;;  %v1095_v18 = vsel %vm655_vm3, %v2185_v50, 0.0 }
 0x437   :  { %1096 = vadd.xlane.f32.xlu1 %v1095_v18  ;;  %v1092_v53 = vsel %vm655_vm3, %v2187_v63, 0.0  ;;  %v1139_v18 = vld [vmem:[%s2325_s1 + $0x48] sm:$0xff] }
 0x438   :  { %1093 = vadd.xlane.f32.xlu0 %v1092_v53  ;;  %vm1155_vm12 = vcmp.ge.f32.partialorder %v1139_v18, 0.1 }
 0x49a   :  { %v1055_v28 = vpop.xlane.xlu1 %1054 }
 0x49b   :  { %1416 = vrcp.f32 %v1055_v28  ;;  %v1138_v28 = vld [vmem:[%s2325_s1 + $0x40] sm:$0xff] }
 0x49c   :  { %vm1154_vm13 = vcmp.ge.f32.partialorder %v1138_v28, 0.1 }
 0x49e   :  { %v1061_v60 = vpop.xlane.xlu1 %1060 }
 0x49f   :  { %1418 = vrcp.f32 %v1061_v60  ;;  %v1052_v31 = vpop.xlane.xlu0 %1051 }
 0x4a0   :  { %1420 = vrcp.f32 %v1052_v31 }
 0x4a3   :  { %v1058_v48 = vpop.xlane.xlu0 %1057 }
 0x4a4   :  { %1422 = vrcp.f32 %v1058_v48 }
 0x4a5   :  { %v1417_v20 = vpop.eup %1416 }
 0x4a6   :  { %v1101_v11 = vmul.f32 %v1417_v20, %v2119_v1  ;;  %v1067_v15 = vpop.xlane.xlu1 %1066 }
 0x4a7   :  { %1424 = vrcp.f32 %v1067_v15  ;;  %v1064_v4 = vpop.xlane.xlu0 %1063  ;;  %v1141_v15 = vld [vmem:[%s2325_s1 + $0x58] sm:$0xff] }
 0x4a8   :  { %v1163_v2 = vmul.f32 1.1111112, %v1101_v11  ;;  %1426 = vrcp.f32 %v1064_v4  ;;  %vm1157_vm14 = vcmp.ge.f32.partialorder %v1141_v15, 0.1 }
 0x4a9   :  { %v1419_v8 = vpop.eup %1418 }
 0x4aa   :  { %v1421_v58 = vpop.eup %1420  ;;  %v1179_v38 = vsel %vm1147_vm4, %v1163_v2, 0.0  ;;  %v1105_v56 = vmul.f32 %v1419_v8, %v2124_v61  ;;  %v1073_v1 = vpop.xlane.xlu1 %1072 }
 0x4ab   :  { %1195 = vst.msk [vmem:[%s2326_s5 + $0x8] sm:$0xff] %vm655_vm3, %v1179_v38  ;;  %v1099_v6 = vmul.f32 %v1421_v58, %v2126_v55  ;;  %1428 = vrcp.f32 %v1073_v1 }
 0x4ac   :  { %v1165_v17 = vmul.f32 1.1111112, %v1105_v56 }
 0x4ad   :  { %v1162_v54 = vmul.f32 1.1111112, %v1099_v6  ;;  %v1070_v19 = vpop.xlane.xlu0 %1069  ;;  %v1142_v6 = vld [vmem:[%s2325_s1 + $0x60] sm:$0xff] }
 0x4ae   :  { %v1423_v9 = vpop.eup %1422  ;;  %v1181_v61 = vsel %vm1149_vm5, %v1165_v17, 0.0  ;;  %1430 = vrcp.f32 %v1070_v19  ;;  %vm1158_vm2 = vcmp.ge.f32.partialorder %v1142_v6, 0.1 }
 0x4af   :  { %1197 = vst.msk [vmem:[%s2326_s5 + $0x18] sm:$0xff] %vm655_vm3, %v1181_v61  ;;  %v1178_v23 = vsel %vm1146_vm6, %v1162_v54, 0.0  ;;  %v1103_v55 = vmul.f32 %v1423_v9, %v2133_v21 }
 0x4b0   :  { %1194 = vst.msk [vmem:[%s2326_s5] sm:$0xff] %vm655_vm3, %v1178_v23 }
 0x4b1   :  { %v1425_v44 = vpop.eup %1424  ;;  %v1164_v49 = vmul.f32 1.1111112, %v1103_v55  ;;  %v1144_v55 = vld [vmem:[%s2325_s1 + $0x70] sm:$0xff] }
 0x4b2   :  { %v1427_v24 = vpop.eup %1426  ;;  %v1109_v25 = vmul.f32 %v1425_v44, %v2137_v47  ;;  %vm1160_vm4 = vcmp.ge.f32.partialorder %v1144_v55, 0.1 }
 0x4b3   :  { %v1180_v21 = vsel %vm1148_vm7, %v1164_v49, 0.0  ;;  %v1107_v27 = vmul.f32 %v1427_v24, %v2139_v30 }
 0x4b4   :  { %1196 = vst.msk [vmem:[%s2326_s5 + $0x10] sm:$0xff] %vm655_vm3, %v1180_v21  ;;  %v1167_v26 = vmul.f32 1.1111112, %v1109_v25 }
 0x4b5   :  { %v1429_v32 = vpop.eup %1428  ;;  %v1166_v40 = vmul.f32 1.1111112, %v1107_v27 }
 0x4b6   :  { %v1183_v51 = vsel %vm1151_vm8, %v1167_v26, 0.0  ;;  %v1113_v47 = vmul.f32 %v1429_v32, %v2145_v16 }
 0x4b7   :  { %1199 = vst.msk [vmem:[%s2326_s5 + $0x28] sm:$0xff] %vm655_vm3, %v1183_v51  ;;  %v1182_v30 = vsel %vm1150_vm9, %v1166_v40, 0.0  ;;  %v1079_v37 = vpop.xlane.xlu1 %1078 }
 0x4b8   :  { %v1431_v35 = vpop.eup %1430  ;;  %1198 = vst.msk [vmem:[%s2326_s5 + $0x20] sm:$0xff] %vm655_vm3, %v1182_v30  ;;  %v1169_v52 = vmul.f32 1.1111112, %v1113_v47  ;;  %1432 = vrcp.f32 %v1079_v37  ;;  %v1076_v10 = vpop.xlane.xlu0 %1075 }
 0x4b9   :  { %v1111_v16 = vmul.f32 %v1431_v35, %v2151_v7  ;;  %1434 = vrcp.f32 %v1076_v10 }
 0x4ba   :  { %v1185_v5 = vsel %vm1153_vm10, %v1169_v52, 0.0 }
 0x4bb   :  { %1201 = vst.msk [vmem:[%s2326_s5 + $0x38] sm:$0xff] %vm655_vm3, %v1185_v5  ;;  %v1168_v57 = vmul.f32 1.1111112, %v1111_v16 }
 0x4bc   :  { %v1085_v12 = vpop.xlane.xlu1 %1084 }
 0x4bd   :  { %v1184_v42 = vsel %vm1152_vm11, %v1168_v57, 0.0  ;;  %1436 = vrcp.f32 %v1085_v12  ;;  %v1082_v62 = vpop.xlane.xlu0 %1081 }
 0x4be   :  { %1200 = vst.msk [vmem:[%s2326_s5 + $0x30] sm:$0xff] %vm655_vm3, %v1184_v42  ;;  %1438 = vrcp.f32 %v1082_v62 }
 0x4c0   :  { %v1091_v7 = vpop.xlane.xlu1 %1090 }
 0x4c1   :  { %1440 = vrcp.f32 %v1091_v7  ;;  %v1088_v43 = vpop.xlane.xlu0 %1087 }
 0x4c2   :  { %1442 = vrcp.f32 %v1088_v43  ;;  %v1433_v53 = vpop.eup %1432 }
 0x4c3   :  { %v1435_v60 = vpop.eup %1434  ;;  %v1117_v31 = vmul.f32 %v1433_v53, %v2161_v33 }
 0x4c4   :  { %v1097_v48 = vpop.xlane.xlu1 %1096  ;;  %v1115_v3 = vmul.f32 %v1435_v60, %v2163_v41 }
 0x4c5   :  { %1444 = vrcp.f32 %v1097_v48  ;;  %v1094_v20 = vpop.xlane.xlu0 %1093  ;;  %v1171_v11 = vmul.f32 1.1111112, %v1117_v31 }
 0x4c6   :  { %1446 = vrcp.f32 %v1094_v20  ;;  %v1170_v2 = vmul.f32 1.1111112, %v1115_v3 }
 0x4c7   :  { %v1437_v4 = vpop.eup %1436  ;;  %v1187_v8 = vsel %vm1155_vm12, %v1171_v11, 0.0 }
 0x4c8   :  { %v1439_v33 = vpop.eup %1438  ;;  %v1121_v13 = vmul.f32 %v1437_v4, %v2169_v14  ;;  %1203 = vst.msk [vmem:[%s2326_s5 + $0x48] sm:$0xff] %vm655_vm3, %v1187_v8  ;;  %v1186_v41 = vsel %vm1154_vm13, %v1170_v2, 0.0  ;;  %v1143_v14 = vld [vmem:[%s2325_s1 + $0x68] sm:$0xff] }
 0x4c9   :  { %v1119_v58 = vmul.f32 %v1439_v33, %v2171_v36  ;;  %1202 = vst.msk [vmem:[%s2326_s5 + $0x40] sm:$0xff] %vm655_vm3, %v1186_v41  ;;  %vm1159_vm0 = vcmp.ge.f32.partialorder %v1143_v14, 0.1 }
 0x4ca   :  { %v1173_v38 = vmul.f32 1.1111112, %v1121_v13 }
 0x4cb   :  { %v1441_v56 = vpop.eup %1440  ;;  %v1172_v1 = vmul.f32 1.1111112, %v1119_v58 }
 0x4cc   :  { %v1443_v17 = vpop.eup %1442  ;;  %v1189_v54 = vsel %vm1157_vm14, %v1173_v38, 0.0  ;;  %v1125_v36 = vmul.f32 %v1441_v56, %v2177_v39  ;;  %v1145_v39 = vld [vmem:[%s2325_s1 + $0x78] sm:$0xff] }
 0x4cd   :  { %1205 = vst.msk [vmem:[%s2326_s5 + $0x58] sm:$0xff] %vm655_vm3, %v1189_v54  ;;  %v1188_v0 = vsel %vm1156_vm15, %v1172_v1, 0.0  ;;  %v1123_v19 = vmul.f32 %v1443_v17, %v2179_v29  ;;  %vm1161_vm1 = vcmp.ge.f32.partialorder %v1145_v39, 0.1 }
 0x4ce   :  { %1204 = vst.msk [vmem:[%s2326_s5 + $0x50] sm:$0xff] %vm655_vm3, %v1188_v0  ;;  %v1175_v9 = vmul.f32 1.1111112, %v1125_v36 }
 0x4cf   :  { %v1445_v61 = vpop.eup %1444  ;;  %v1174_v23 = vmul.f32 1.1111112, %v1123_v19 }
 0x4d0   :  { %v1447_v22 = vpop.eup %1446  ;;  %v1191_v44 = vsel %vm1159_vm0, %v1175_v9, 0.0  ;;  %v1129_v29 = vmul.f32 %v1445_v61, %v2185_v50 }
 0x4d1   :  { %1207 = vst.msk [vmem:[%s2326_s5 + $0x68] sm:$0xff] %vm655_vm3, %v1191_v44  ;;  %v1190_v49 = vsel %vm1158_vm2, %v1174_v23, 0.0  ;;  %v1127_v45 = vmul.f32 %v1447_v22, %v2187_v63 }
 0x4d2   :  { %1206 = vst.msk [vmem:[%s2326_s5 + $0x60] sm:$0xff] %vm655_vm3, %v1190_v49  ;;  %v1177_v24 = vmul.f32 1.1111112, %v1129_v29 }
 0x4d3   :  { %v1176_v25 = vmul.f32 1.1111112, %v1127_v45 }
 0x4d4   :  { %v1193_v21 = vsel %vm1161_vm1, %v1177_v24, 0.0 }
 0x4d5   :  { %1209 = vst.msk [vmem:[%s2326_s5 + $0x78] sm:$0xff] %vm655_vm3, %v1193_v21  ;;  %v1192_v50 = vsel %vm1160_vm4, %v1176_v25, 0.0 }
 0x4d6   :  { %1208 = vst.msk [vmem:[%s2326_s5 + $0x70] sm:$0xff] %vm655_vm3, %v1192_v50 }

</bundles_post_ra>
